<compile_context>
chip_gen: v6e
topology: v6e:2x2x1
jax: 0.10.0
libtpu: 0.0.40
codegen_flags: <defaults>
</compile_context>

<pallas_src>
import functools

import jax
import jax.numpy as jnp
from jax import lax
from jax.experimental import pallas as pl
from jax.experimental.pallas import tpu as pltpu

BN_EPS = 1e-5


def _resblock_kernel(x_ref, mask_ref, w1_ref, g1_ref, b1_ref,
                     w2_ref, g2_ref, b2_ref, o_ref,
                     xflat_ref, p1_ref, yflat_ref, p2_ref, *, H, W):
    _, M = x_ref.shape
    P = W + 1                                    # flat halo: one row + one pixel

    def conv3x3(src, flat_ref, patch_ref, wm_ref):
        """3x3 / stride-1 / pad-1 conv of src (C, M) -> (Cout, M), single matmul."""
        C = flat_ref.shape[0]
        # Stage src into a flat buffer with a zeroed halo of P columns per side
        # (halo-only zeroing; every halo read is additionally masked below).
        flat_ref[:, 0:P] = jnp.zeros((C, P), jnp.float32)
        flat_ref[:, P + M:P + M + P] = jnp.zeros((C, P), jnp.float32)
        flat_ref[:, P:P + M] = src
        # Gather the 9 shifted taps as lane-offset slice loads, zero the
        # out-of-row / out-of-image positions with the precomputed masks, and
        # assemble the (9*C, M) im2col patch in VMEM.
        for t in range(9):
            dy, dx = t // 3 - 1, t % 3 - 1       # tap offsets in {-1, 0, 1}
            s = dy * W + dx                      # shift along the flattened M axis
            tap = flat_ref[:, P + s:P + s + M]   # (C, M)
            if t != 4:                           # center tap is always in-bounds
                tap = tap * mask_ref[t]          # (1, M) boundary mask
            patch_ref[t * C:(t + 1) * C, :] = tap
        # One K = 9*C MXU contraction -> lane-dense (Cout, M) accumulator.
        return jnp.dot(wm_ref[...], patch_ref[...],
                       preferred_element_type=jnp.float32)

    def bn(acc, g_ref, b_ref):
        """Training-mode batch norm folded into per-channel scale/shift."""
        mean = jnp.mean(acc, axis=1, keepdims=True)                   # (C, 1)
        var = jnp.mean(jnp.square(acc - mean), axis=1, keepdims=True)  # biased
        scale = g_ref[...] * lax.rsqrt(var + BN_EPS)                  # EUP rsqrt
        shift = b_ref[...] - mean * scale
        return acc * scale + shift

    x = x_ref[...]                                                    # (Cin, M)
    y1 = jnp.maximum(bn(conv3x3(x, xflat_ref, p1_ref, w1_ref),
                        g1_ref, b1_ref), 0.0)                         # (C1, M)
    y2 = bn(conv3x3(y1, yflat_ref, p2_ref, w2_ref), g2_ref, b2_ref)   # (C2, M)
    o_ref[...] = jnp.maximum(y2 + x, 0.0)            # residual add + final relu


def residual_building_block(x_nchw, w1, g1, b1, w2, g2, b2):
    """Fused ResidualBuildingBlock forward (stride_1 == stride_2 == 1), NCHW in/out."""
    # TODO(synk): the stride_1 != stride_2 branch of the PyTorch forward (a fresh
    # randomly-initialized conv+BN applied to the identity) is not implemented;
    # with equal strides PyTorch never takes that branch either.
    N, Cin, H, W = x_nchw.shape
    C1 = w1.shape[-1]
    C2 = w2.shape[-1]
    assert Cin == C2, "residual add requires in_channels == out_channels_2"
    M = N * H * W
    P = W + 1

    # ---- layout plumbing (pure XLA glue, outside the kernel) ----
    # activations: channels-major, spatial flattened so M = N*H*W sits on lanes
    x_cm = jnp.transpose(x_nchw, (1, 0, 2, 3)).reshape(Cin, M)
    # conv weights HWIO (3,3,Ci,Co) -> (Co, 9*Ci), K ordered as (tap, in-channel)
    w1m = jnp.transpose(w1, (3, 0, 1, 2)).reshape(C1, 9 * Cin)
    w2m = jnp.transpose(w2, (3, 0, 1, 2)).reshape(C2, 9 * C1)
    g1c, b1c = g1.reshape(C1, 1), b1.reshape(C1, 1)
    g2c, b2c = g2.reshape(C2, 1), b2.reshape(C2, 1)
    # per-tap boundary masks over the flattened M axis (shared by both convs)
    hh = jnp.arange(H)[:, None]
    ww = jnp.arange(W)[None, :]
    rows = []
    for dy in (-1, 0, 1):
        for dx in (-1, 0, 1):
            valid = ((hh + dy >= 0) & (hh + dy < H) &
                     (ww + dx >= 0) & (ww + dx < W)).astype(jnp.float32)  # (H, W)
            rows.append(jnp.tile(valid.reshape(1, H * W), (1, N)))        # (1, M)
    tap_masks = jnp.stack(rows)                                           # (9, 1, M)

    full = lambda a: pl.BlockSpec(a.shape, lambda i: (0,) * a.ndim)
    kernel = functools.partial(_resblock_kernel, H=H, W=W)

    out_cm = pl.pallas_call(
        kernel,
        out_shape=jax.ShapeDtypeStruct((C2, M), jnp.float32),
        grid=(1,),
        in_specs=[full(x_cm), full(tap_masks), full(w1m), full(g1c), full(b1c),
                  full(w2m), full(g2c), full(b2c)],
        out_specs=pl.BlockSpec((C2, M), lambda i: (0, 0)),
        scratch_shapes=[
            pltpu.VMEM((Cin, M + 2 * P), jnp.float32),   # flat halo-padded input
            pltpu.VMEM((9 * Cin, M), jnp.float32),       # im2col patch, conv1
            pltpu.VMEM((C1, M + 2 * P), jnp.float32),    # flat halo-padded relu(bn1)
            pltpu.VMEM((9 * C1, M), jnp.float32),        # im2col patch, conv2
        ],
        compiler_params=pltpu.CompilerParams(
            dimension_semantics=("arbitrary",),
            vmem_limit_bytes=32 * 1024 * 1024),          # explicit; usage is <1 MiB here
    )(x_cm, tap_masks, w1m, g1c, b1c, w2m, g2c, b2c)

    # back to PyTorch NCHW
    return jnp.transpose(out_cm.reshape(C2, N, H, W), (1, 0, 2, 3))


def reference(x_nchw, w1, g1, b1, w2, g2, b2):
    """Pure-JAX reference with identical semantics (NCHW)."""
    def conv(x, w):
        return lax.conv_general_dilated(
            x, w, window_strides=(1, 1), padding=((1, 1), (1, 1)),
            dimension_numbers=('NCHW', 'HWIO', 'NCHW'))

    def bn(x, g, b):
        m = jnp.mean(x, axis=(0, 2, 3), keepdims=True)
        v = jnp.mean(jnp.square(x - m), axis=(0, 2, 3), keepdims=True)
        return ((x - m) * lax.rsqrt(v + BN_EPS)
                * g.reshape(1, -1, 1, 1) + b.reshape(1, -1, 1, 1))

    y = jnp.maximum(bn(conv(x_nchw, w1), g1, b1), 0.0)
    y = bn(conv(y, w2), g2, b2)
    return jnp.maximum(y + x_nchw, 0.0)


if __name__ == "__main__":
    key = jax.random.PRNGKey(0)
    k1, k2, kx = jax.random.split(key, 3)

    # ResidualBuildingBlock(in_channels=4, out_channels_1=4, out_channels_2=4,
    #                       stride_1=1, stride_2=1); PyTorch input NCHW = (2, 4, 16, 16)
    N, C, H, W = 2, 4, 16, 16
    C1, C2 = 4, 4

    x = jax.random.normal(kx, (N, C, H, W), jnp.float32)
    # conv weights (deterministic synthetic init), HWIO layout
    w1 = 0.1 * jax.random.normal(k1, (3, 3, C, C1), jnp.float32)
    w2 = 0.1 * jax.random.normal(k2, (3, 3, C1, C2), jnp.float32)
    # BatchNorm affine params (PyTorch default init: weight=1, bias=0)
    g1 = jnp.ones((C1,), jnp.float32)
    b1 = jnp.zeros((C1,), jnp.float32)
    g2 = jnp.ones((C2,), jnp.float32)
    b2 = jnp.zeros((C2,), jnp.float32)

    out = residual_building_block(x, w1, g1, b1, w2, g2, b2)
    out = jax.block_until_ready(out)
    ref = reference(x, w1, g1, b1, w2, g2, b2)

    assert out.shape == (N, C2, H, W)
    assert jnp.allclose(out, ref, atol=1e-4, rtol=1e-4), \
        "Pallas kernel output mismatch vs JAX reference"

    print("KERNEL_OK")
</pallas_src>

<mosaic_0001>
module attributes {stable_mosaic.version = 11 : i64} {
  func.func @_resblock_kernel(%arg0: i32, %arg1: memref<4x512xf32, #tpu.memory_space<vmem>>, %arg2: memref<9x1x512xf32, #tpu.memory_space<vmem>>, %arg3: memref<4x36xf32, #tpu.memory_space<vmem>>, %arg4: memref<4x1xf32, #tpu.memory_space<vmem>>, %arg5: memref<4x1xf32, #tpu.memory_space<vmem>>, %arg6: memref<4x36xf32, #tpu.memory_space<vmem>>, %arg7: memref<4x1xf32, #tpu.memory_space<vmem>>, %arg8: memref<4x1xf32, #tpu.memory_space<vmem>>, %arg9: memref<4x512xf32, #tpu.memory_space<vmem>>, %arg10: memref<4x546xf32, #tpu.memory_space<vmem>>, %arg11: memref<36x512xf32, #tpu.memory_space<vmem>>, %arg12: memref<4x546xf32, #tpu.memory_space<vmem>>, %arg13: memref<36x512xf32, #tpu.memory_space<vmem>>) attributes {dimension_semantics = [#tpu.dimension_semantics<arbitrary>], iteration_bounds = array<i64: 1>, scalar_prefetch = 0 : i64, scratch_operands = 4 : i64, tpu.core_type = #tpu.core_type<tc>, window_params = [{pipeline_mode = #tpu.pipeline_mode<synchronous>, transform_indices = @transform_0, window_bounds = array<i64: 4, 512>}, {pipeline_mode = #tpu.pipeline_mode<synchronous>, transform_indices = @transform_1, window_bounds = array<i64: 9, 1, 512>}, {pipeline_mode = #tpu.pipeline_mode<synchronous>, transform_indices = @transform_2, window_bounds = array<i64: 4, 36>}, {pipeline_mode = #tpu.pipeline_mode<synchronous>, transform_indices = @transform_3, window_bounds = array<i64: 4, 1>}, {pipeline_mode = #tpu.pipeline_mode<synchronous>, transform_indices = @transform_4, window_bounds = array<i64: 4, 1>}, {pipeline_mode = #tpu.pipeline_mode<synchronous>, transform_indices = @transform_5, window_bounds = array<i64: 4, 36>}, {pipeline_mode = #tpu.pipeline_mode<synchronous>, transform_indices = @transform_6, window_bounds = array<i64: 4, 1>}, {pipeline_mode = #tpu.pipeline_mode<synchronous>, transform_indices = @transform_7, window_bounds = array<i64: 4, 1>}, {pipeline_mode = #tpu.pipeline_mode<synchronous>, transform_indices = @transform_8, window_bounds = array<i64: 4, 512>}]} {
    %c0 = arith.constant 0 : index
    %c0_0 = arith.constant 0 : index
    %0 = vector.load %arg1[%c0, %c0_0] : memref<4x512xf32, #tpu.memory_space<vmem>>, vector<4x512xf32>
    %cst = arith.constant 0.000000e+00 : f32
    %1 = vector.broadcast %cst : f32 to vector<4x17xf32>
    %c0_1 = arith.constant 0 : index
    %c0_2 = arith.constant 0 : index
    %2 = vector.load %arg10[%c0_1, %c0_2] : memref<4x546xf32, #tpu.memory_space<vmem>>, vector<4x17xf32>
    tpu.vector_store %arg10[%c0_1, %c0_2], %1 {strides = array<i32>} : memref<4x546xf32, #tpu.memory_space<vmem>>, vector<4x17xf32>,
    %cst_3 = arith.constant 0.000000e+00 : f32
    %3 = vector.broadcast %cst_3 : f32 to vector<4x17xf32>
    %c0_4 = arith.constant 0 : index
    %c529 = arith.constant 529 : index
    %4 = vector.load %arg10[%c0_4, %c529] : memref<4x546xf32, #tpu.memory_space<vmem>>, vector<4x17xf32>
    tpu.vector_store %arg10[%c0_4, %c529], %3 {strides = array<i32>} : memref<4x546xf32, #tpu.memory_space<vmem>>, vector<4x17xf32>,
    %c0_5 = arith.constant 0 : index
    %c17 = arith.constant 17 : index
    %5 = vector.load %arg10[%c0_5, %c17] : memref<4x546xf32, #tpu.memory_space<vmem>>, vector<4x512xf32>
    tpu.vector_store %arg10[%c0_5, %c17], %0 {strides = array<i32>} : memref<4x546xf32, #tpu.memory_space<vmem>>, vector<4x512xf32>,
    %c0_6 = arith.constant 0 : index
    %c0_7 = arith.constant 0 : index
    %6 = vector.load %arg10[%c0_6, %c0_7] : memref<4x546xf32, #tpu.memory_space<vmem>>, vector<4x512xf32>
    %c0_8 = arith.constant 0 : index
    %c0_9 = arith.constant 0 : index
    %c0_10 = arith.constant 0 : index
    %7 = vector.load %arg2[%c0_8, %c0_9, %c0_10] : memref<9x1x512xf32, #tpu.memory_space<vmem>>, vector<1x1x512xf32>
    %8 = vector.shape_cast %7 : vector<1x1x512xf32> to vector<1x512xf32>
    %9 = vector.broadcast %8 : vector<1x512xf32> to vector<4x512xf32>
    %10 = arith.mulf %6, %9 : vector<4x512xf32>
    %c0_11 = arith.constant 0 : index
    %c0_12 = arith.constant 0 : index
    %11 = vector.load %arg11[%c0_11, %c0_12] : memref<36x512xf32, #tpu.memory_space<vmem>>, vector<4x512xf32>
    tpu.vector_store %arg11[%c0_11, %c0_12], %10 {strides = array<i32>} : memref<36x512xf32, #tpu.memory_space<vmem>>, vector<4x512xf32>,
    %c0_13 = arith.constant 0 : index
    %c1 = arith.constant 1 : index
    %12 = vector.load %arg10[%c0_13, %c1] : memref<4x546xf32, #tpu.memory_space<vmem>>, vector<4x512xf32>
    %c1_14 = arith.constant 1 : index
    %c0_15 = arith.constant 0 : index
    %c0_16 = arith.constant 0 : index
    %13 = vector.load %arg2[%c1_14, %c0_15, %c0_16] : memref<9x1x512xf32, #tpu.memory_space<vmem>>, vector<1x1x512xf32>
    %14 = vector.shape_cast %13 : vector<1x1x512xf32> to vector<1x512xf32>
    %15 = vector.broadcast %14 : vector<1x512xf32> to vector<4x512xf32>
    %16 = arith.mulf %12, %15 : vector<4x512xf32>
    %c4 = arith.constant 4 : index
    %c0_17 = arith.constant 0 : index
    %17 = vector.load %arg11[%c4, %c0_17] : memref<36x512xf32, #tpu.memory_space<vmem>>, vector<4x512xf32>
    tpu.vector_store %arg11[%c4, %c0_17], %16 {strides = array<i32>} : memref<36x512xf32, #tpu.memory_space<vmem>>, vector<4x512xf32>,
    %c0_18 = arith.constant 0 : index
    %c2 = arith.constant 2 : index
    %18 = vector.load %arg10[%c0_18, %c2] : memref<4x546xf32, #tpu.memory_space<vmem>>, vector<4x512xf32>
    %c2_19 = arith.constant 2 : index
    %c0_20 = arith.constant 0 : index
    %c0_21 = arith.constant 0 : index
    %19 = vector.load %arg2[%c2_19, %c0_20, %c0_21] : memref<9x1x512xf32, #tpu.memory_space<vmem>>, vector<1x1x512xf32>
    %20 = vector.shape_cast %19 : vector<1x1x512xf32> to vector<1x512xf32>
    %21 = vector.broadcast %20 : vector<1x512xf32> to vector<4x512xf32>
    %22 = arith.mulf %18, %21 : vector<4x512xf32>
    %c8 = arith.constant 8 : index
    %c0_22 = arith.constant 0 : index
    %23 = vector.load %arg11[%c8, %c0_22] : memref<36x512xf32, #tpu.memory_space<vmem>>, vector<4x512xf32>
    tpu.vector_store %arg11[%c8, %c0_22], %22 {strides = array<i32>} : memref<36x512xf32, #tpu.memory_space<vmem>>, vector<4x512xf32>,
    %c0_23 = arith.constant 0 : index
    %c16 = arith.constant 16 : index
    %24 = vector.load %arg10[%c0_23, %c16] : memref<4x546xf32, #tpu.memory_space<vmem>>, vector<4x512xf32>
    %c3 = arith.constant 3 : index
    %c0_24 = arith.constant 0 : index
    %c0_25 = arith.constant 0 : index
    %25 = vector.load %arg2[%c3, %c0_24, %c0_25] : memref<9x1x512xf32, #tpu.memory_space<vmem>>, vector<1x1x512xf32>
    %26 = vector.shape_cast %25 : vector<1x1x512xf32> to vector<1x512xf32>
    %27 = vector.broadcast %26 : vector<1x512xf32> to vector<4x512xf32>
    %28 = arith.mulf %24, %27 : vector<4x512xf32>
    %c12 = arith.constant 12 : index
    %c0_26 = arith.constant 0 : index
    %29 = vector.load %arg11[%c12, %c0_26] : memref<36x512xf32, #tpu.memory_space<vmem>>, vector<4x512xf32>
    tpu.vector_store %arg11[%c12, %c0_26], %28 {strides = array<i32>} : memref<36x512xf32, #tpu.memory_space<vmem>>, vector<4x512xf32>,
    %c0_27 = arith.constant 0 : index
    %c17_28 = arith.constant 17 : index
    %30 = vector.load %arg10[%c0_27, %c17_28] : memref<4x546xf32, #tpu.memory_space<vmem>>, vector<4x512xf32>
    %c16_29 = arith.constant 16 : index
    %c0_30 = arith.constant 0 : index
    %31 = vector.load %arg11[%c16_29, %c0_30] : memref<36x512xf32, #tpu.memory_space<vmem>>, vector<4x512xf32>
    tpu.vector_store %arg11[%c16_29, %c0_30], %30 {strides = array<i32>} : memref<36x512xf32, #tpu.memory_space<vmem>>, vector<4x512xf32>,
    %c0_31 = arith.constant 0 : index
    %c18 = arith.constant 18 : index
    %32 = vector.load %arg10[%c0_31, %c18] : memref<4x546xf32, #tpu.memory_space<vmem>>, vector<4x512xf32>
    %c5 = arith.constant 5 : index
    %c0_32 = arith.constant 0 : index
    %c0_33 = arith.constant 0 : index
    %33 = vector.load %arg2[%c5, %c0_32, %c0_33] : memref<9x1x512xf32, #tpu.memory_space<vmem>>, vector<1x1x512xf32>
    %34 = vector.shape_cast %33 : vector<1x1x512xf32> to vector<1x512xf32>
    %35 = vector.broadcast %34 : vector<1x512xf32> to vector<4x512xf32>
    %36 = arith.mulf %32, %35 : vector<4x512xf32>
    %c20 = arith.constant 20 : index
    %c0_34 = arith.constant 0 : index
    %37 = vector.load %arg11[%c20, %c0_34] : memref<36x512xf32, #tpu.memory_space<vmem>>, vector<4x512xf32>
    tpu.vector_store %arg11[%c20, %c0_34], %36 {strides = array<i32>} : memref<36x512xf32, #tpu.memory_space<vmem>>, vector<4x512xf32>,
    %c0_35 = arith.constant 0 : index
    %c32 = arith.constant 32 : index
    %38 = vector.load %arg10[%c0_35, %c32] : memref<4x546xf32, #tpu.memory_space<vmem>>, vector<4x512xf32>
    %c6 = arith.constant 6 : index
    %c0_36 = arith.constant 0 : index
    %c0_37 = arith.constant 0 : index
    %39 = vector.load %arg2[%c6, %c0_36, %c0_37] : memref<9x1x512xf32, #tpu.memory_space<vmem>>, vector<1x1x512xf32>
    %40 = vector.shape_cast %39 : vector<1x1x512xf32> to vector<1x512xf32>
    %41 = vector.broadcast %40 : vector<1x512xf32> to vector<4x512xf32>
    %42 = arith.mulf %38, %41 : vector<4x512xf32>
    %c24 = arith.constant 24 : index
    %c0_38 = arith.constant 0 : index
    %43 = vector.load %arg11[%c24, %c0_38] : memref<36x512xf32, #tpu.memory_space<vmem>>, vector<4x512xf32>
    tpu.vector_store %arg11[%c24, %c0_38], %42 {strides = array<i32>} : memref<36x512xf32, #tpu.memory_space<vmem>>, vector<4x512xf32>,
    %c0_39 = arith.constant 0 : index
    %c33 = arith.constant 33 : index
    %44 = vector.load %arg10[%c0_39, %c33] : memref<4x546xf32, #tpu.memory_space<vmem>>, vector<4x512xf32>
    %c7 = arith.constant 7 : index
    %c0_40 = arith.constant 0 : index
    %c0_41 = arith.constant 0 : index
    %45 = vector.load %arg2[%c7, %c0_40, %c0_41] : memref<9x1x512xf32, #tpu.memory_space<vmem>>, vector<1x1x512xf32>
    %46 = vector.shape_cast %45 : vector<1x1x512xf32> to vector<1x512xf32>
    %47 = vector.broadcast %46 : vector<1x512xf32> to vector<4x512xf32>
    %48 = arith.mulf %44, %47 : vector<4x512xf32>
    %c28 = arith.constant 28 : index
    %c0_42 = arith.constant 0 : index
    %49 = vector.load %arg11[%c28, %c0_42] : memref<36x512xf32, #tpu.memory_space<vmem>>, vector<4x512xf32>
    tpu.vector_store %arg11[%c28, %c0_42], %48 {strides = array<i32>} : memref<36x512xf32, #tpu.memory_space<vmem>>, vector<4x512xf32>,
    %c0_43 = arith.constant 0 : index
    %c34 = arith.constant 34 : index
    %50 = vector.load %arg10[%c0_43, %c34] : memref<4x546xf32, #tpu.memory_space<vmem>>, vector<4x512xf32>
    %c8_44 = arith.constant 8 : index
    %c0_45 = arith.constant 0 : index
    %c0_46 = arith.constant 0 : index
    %51 = vector.load %arg2[%c8_44, %c0_45, %c0_46] : memref<9x1x512xf32, #tpu.memory_space<vmem>>, vector<1x1x512xf32>
    %52 = vector.shape_cast %51 : vector<1x1x512xf32> to vector<1x512xf32>
    %53 = vector.broadcast %52 : vector<1x512xf32> to vector<4x512xf32>
    %54 = arith.mulf %50, %53 : vector<4x512xf32>
    %c32_47 = arith.constant 32 : index
    %c0_48 = arith.constant 0 : index
    %55 = vector.load %arg11[%c32_47, %c0_48] : memref<36x512xf32, #tpu.memory_space<vmem>>, vector<4x512xf32>
    tpu.vector_store %arg11[%c32_47, %c0_48], %54 {strides = array<i32>} : memref<36x512xf32, #tpu.memory_space<vmem>>, vector<4x512xf32>,
    %c0_49 = arith.constant 0 : index
    %c0_50 = arith.constant 0 : index
    %56 = vector.load %arg3[%c0_49, %c0_50] : memref<4x36xf32, #tpu.memory_space<vmem>>, vector<4x36xf32>
    %c0_51 = arith.constant 0 : index
    %c0_52 = arith.constant 0 : index
    %57 = vector.load %arg11[%c0_51, %c0_52] : memref<36x512xf32, #tpu.memory_space<vmem>>, vector<36x512xf32>
    %cst_53 = arith.constant dense<0.000000e+00> : vector<4x512xf32>
    %58 = tpu.matmul %56, %57, %cst_53 {dimension_numbers = #tpu.dot_dimension_numbers<[1], [0], [0], [1], [0, 0, 1, 1], [], []>} : vector<4x36xf32>, vector<36x512xf32>, vector<4x512xf32> -> vector<4x512xf32>
    %cst_54 = arith.constant dense<0.000000e+00> : vector<4xf32>
    %59 = vector.multi_reduction <add>, %58, %cst_54 [1] : vector<4x512xf32> to vector<4xf32>
    %60 = vector.shape_cast %59 : vector<4xf32> to vector<4x1xf32>
    %cst_55 = arith.constant 5.120000e+02 : f32
    %61 = vector.broadcast %cst_55 : f32 to vector<4x1xf32>
    %62 = arith.divf %60, %61 : vector<4x1xf32>
    %63 = vector.broadcast %62 : vector<4x1xf32> to vector<4x512xf32>
    %64 = arith.subf %58, %63 : vector<4x512xf32>
    %65 = arith.mulf %64, %64 : vector<4x512xf32>
    %cst_56 = arith.constant dense<0.000000e+00> : vector<4xf32>
    %66 = vector.multi_reduction <add>, %65, %cst_56 [1] : vector<4x512xf32> to vector<4xf32>
    %67 = vector.shape_cast %66 : vector<4xf32> to vector<4x1xf32>
    %cst_57 = arith.constant 5.120000e+02 : f32
    %68 = vector.broadcast %cst_57 : f32 to vector<4x1xf32>
    %69 = arith.divf %67, %68 : vector<4x1xf32>
    %c0_58 = arith.constant 0 : index
    %c0_59 = arith.constant 0 : index
    %70 = vector.load %arg4[%c0_58, %c0_59] : memref<4x1xf32, #tpu.memory_space<vmem>>, vector<4x1xf32>
    %cst_60 = arith.constant 9.99999974E-6 : f32
    %71 = vector.broadcast %cst_60 : f32 to vector<4x1xf32>
    %72 = arith.addf %69, %71 : vector<4x1xf32>
    %73 = math.rsqrt %72 : vector<4x1xf32>
    %74 = arith.mulf %70, %73 : vector<4x1xf32>
    %c0_61 = arith.constant 0 : index
    %c0_62 = arith.constant 0 : index
    %75 = vector.load %arg5[%c0_61, %c0_62] : memref<4x1xf32, #tpu.memory_space<vmem>>, vector<4x1xf32>
    %76 = arith.mulf %62, %74 : vector<4x1xf32>
    %77 = arith.subf %75, %76 : vector<4x1xf32>
    %78 = vector.broadcast %74 : vector<4x1xf32> to vector<4x512xf32>
    %79 = arith.mulf %58, %78 : vector<4x512xf32>
    %80 = vector.broadcast %77 : vector<4x1xf32> to vector<4x512xf32>
    %81 = arith.addf %79, %80 : vector<4x512xf32>
    %cst_63 = arith.constant 0.000000e+00 : f32
    %82 = vector.broadcast %cst_63 : f32 to vector<4x512xf32>
    %83 = arith.maximumf %81, %82 : vector<4x512xf32>
    %cst_64 = arith.constant 0.000000e+00 : f32
    %84 = vector.broadcast %cst_64 : f32 to vector<4x17xf32>
    %c0_65 = arith.constant 0 : index
    %c0_66 = arith.constant 0 : index
    %85 = vector.load %arg12[%c0_65, %c0_66] : memref<4x546xf32, #tpu.memory_space<vmem>>, vector<4x17xf32>
    tpu.vector_store %arg12[%c0_65, %c0_66], %84 {strides = array<i32>} : memref<4x546xf32, #tpu.memory_space<vmem>>, vector<4x17xf32>,
    %cst_67 = arith.constant 0.000000e+00 : f32
    %86 = vector.broadcast %cst_67 : f32 to vector<4x17xf32>
    %c0_68 = arith.constant 0 : index
    %c529_69 = arith.constant 529 : index
    %87 = vector.load %arg12[%c0_68, %c529_69] : memref<4x546xf32, #tpu.memory_space<vmem>>, vector<4x17xf32>
    tpu.vector_store %arg12[%c0_68, %c529_69], %86 {strides = array<i32>} : memref<4x546xf32, #tpu.memory_space<vmem>>, vector<4x17xf32>,
    %c0_70 = arith.constant 0 : index
    %c17_71 = arith.constant 17 : index
    %88 = vector.load %arg12[%c0_70, %c17_71] : memref<4x546xf32, #tpu.memory_space<vmem>>, vector<4x512xf32>
    tpu.vector_store %arg12[%c0_70, %c17_71], %83 {strides = array<i32>} : memref<4x546xf32, #tpu.memory_space<vmem>>, vector<4x512xf32>,
    %c0_72 = arith.constant 0 : index
    %c0_73 = arith.constant 0 : index
    %89 = vector.load %arg12[%c0_72, %c0_73] : memref<4x546xf32, #tpu.memory_space<vmem>>, vector<4x512xf32>
    %c0_74 = arith.constant 0 : index
    %c0_75 = arith.constant 0 : index
    %c0_76 = arith.constant 0 : index
    %90 = vector.load %arg2[%c0_74, %c0_75, %c0_76] : memref<9x1x512xf32, #tpu.memory_space<vmem>>, vector<1x1x512xf32>
    %91 = vector.shape_cast %90 : vector<1x1x512xf32> to vector<1x512xf32>
    %92 = vector.broadcast %91 : vector<1x512xf32> to vector<4x512xf32>
    %93 = arith.mulf %89, %92 : vector<4x512xf32>
    %c0_77 = arith.constant 0 : index
    %c0_78 = arith.constant 0 : index
    %94 = vector.load %arg13[%c0_77, %c0_78] : memref<36x512xf32, #tpu.memory_space<vmem>>, vector<4x512xf32>
    tpu.vector_store %arg13[%c0_77, %c0_78], %93 {strides = array<i32>} : memref<36x512xf32, #tpu.memory_space<vmem>>, vector<4x512xf32>,
    %c0_79 = arith.constant 0 : index
    %c1_80 = arith.constant 1 : index
    %95 = vector.load %arg12[%c0_79, %c1_80] : memref<4x546xf32, #tpu.memory_space<vmem>>, vector<4x512xf32>
    %c1_81 = arith.constant 1 : index
    %c0_82 = arith.constant 0 : index
    %c0_83 = arith.constant 0 : index
    %96 = vector.load %arg2[%c1_81, %c0_82, %c0_83] : memref<9x1x512xf32, #tpu.memory_space<vmem>>, vector<1x1x512xf32>
    %97 = vector.shape_cast %96 : vector<1x1x512xf32> to vector<1x512xf32>
    %98 = vector.broadcast %97 : vector<1x512xf32> to vector<4x512xf32>
    %99 = arith.mulf %95, %98 : vector<4x512xf32>
    %c4_84 = arith.constant 4 : index
    %c0_85 = arith.constant 0 : index
    %100 = vector.load %arg13[%c4_84, %c0_85] : memref<36x512xf32, #tpu.memory_space<vmem>>, vector<4x512xf32>
    tpu.vector_store %arg13[%c4_84, %c0_85], %99 {strides = array<i32>} : memref<36x512xf32, #tpu.memory_space<vmem>>, vector<4x512xf32>,
    %c0_86 = arith.constant 0 : index
    %c2_87 = arith.constant 2 : index
    %101 = vector.load %arg12[%c0_86, %c2_87] : memref<4x546xf32, #tpu.memory_space<vmem>>, vector<4x512xf32>
    %c2_88 = arith.constant 2 : index
    %c0_89 = arith.constant 0 : index
    %c0_90 = arith.constant 0 : index
    %102 = vector.load %arg2[%c2_88, %c0_89, %c0_90] : memref<9x1x512xf32, #tpu.memory_space<vmem>>, vector<1x1x512xf32>
    %103 = vector.shape_cast %102 : vector<1x1x512xf32> to vector<1x512xf32>
    %104 = vector.broadcast %103 : vector<1x512xf32> to vector<4x512xf32>
    %105 = arith.mulf %101, %104 : vector<4x512xf32>
    %c8_91 = arith.constant 8 : index
    %c0_92 = arith.constant 0 : index
    %106 = vector.load %arg13[%c8_91, %c0_92] : memref<36x512xf32, #tpu.memory_space<vmem>>, vector<4x512xf32>
    tpu.vector_store %arg13[%c8_91, %c0_92], %105 {strides = array<i32>} : memref<36x512xf32, #tpu.memory_space<vmem>>, vector<4x512xf32>,
    %c0_93 = arith.constant 0 : index
    %c16_94 = arith.constant 16 : index
    %107 = vector.load %arg12[%c0_93, %c16_94] : memref<4x546xf32, #tpu.memory_space<vmem>>, vector<4x512xf32>
    %c3_95 = arith.constant 3 : index
    %c0_96 = arith.constant 0 : index
    %c0_97 = arith.constant 0 : index
    %108 = vector.load %arg2[%c3_95, %c0_96, %c0_97] : memref<9x1x512xf32, #tpu.memory_space<vmem>>, vector<1x1x512xf32>
    %109 = vector.shape_cast %108 : vector<1x1x512xf32> to vector<1x512xf32>
    %110 = vector.broadcast %109 : vector<1x512xf32> to vector<4x512xf32>
    %111 = arith.mulf %107, %110 : vector<4x512xf32>
    %c12_98 = arith.constant 12 : index
    %c0_99 = arith.constant 0 : index
    %112 = vector.load %arg13[%c12_98, %c0_99] : memref<36x512xf32, #tpu.memory_space<vmem>>, vector<4x512xf32>
    tpu.vector_store %arg13[%c12_98, %c0_99], %111 {strides = array<i32>} : memref<36x512xf32, #tpu.memory_space<vmem>>, vector<4x512xf32>,
    %c0_100 = arith.constant 0 : index
    %c17_101 = arith.constant 17 : index
    %113 = vector.load %arg12[%c0_100, %c17_101] : memref<4x546xf32, #tpu.memory_space<vmem>>, vector<4x512xf32>
    %c16_102 = arith.constant 16 : index
    %c0_103 = arith.constant 0 : index
    %114 = vector.load %arg13[%c16_102, %c0_103] : memref<36x512xf32, #tpu.memory_space<vmem>>, vector<4x512xf32>
    tpu.vector_store %arg13[%c16_102, %c0_103], %113 {strides = array<i32>} : memref<36x512xf32, #tpu.memory_space<vmem>>, vector<4x512xf32>,
    %c0_104 = arith.constant 0 : index
    %c18_105 = arith.constant 18 : index
    %115 = vector.load %arg12[%c0_104, %c18_105] : memref<4x546xf32, #tpu.memory_space<vmem>>, vector<4x512xf32>
    %c5_106 = arith.constant 5 : index
    %c0_107 = arith.constant 0 : index
    %c0_108 = arith.constant 0 : index
    %116 = vector.load %arg2[%c5_106, %c0_107, %c0_108] : memref<9x1x512xf32, #tpu.memory_space<vmem>>, vector<1x1x512xf32>
    %117 = vector.shape_cast %116 : vector<1x1x512xf32> to vector<1x512xf32>
    %118 = vector.broadcast %117 : vector<1x512xf32> to vector<4x512xf32>
    %119 = arith.mulf %115, %118 : vector<4x512xf32>
    %c20_109 = arith.constant 20 : index
    %c0_110 = arith.constant 0 : index
    %120 = vector.load %arg13[%c20_109, %c0_110] : memref<36x512xf32, #tpu.memory_space<vmem>>, vector<4x512xf32>
    tpu.vector_store %arg13[%c20_109, %c0_110], %119 {strides = array<i32>} : memref<36x512xf32, #tpu.memory_space<vmem>>, vector<4x512xf32>,
    %c0_111 = arith.constant 0 : index
    %c32_112 = arith.constant 32 : index
    %121 = vector.load %arg12[%c0_111, %c32_112] : memref<4x546xf32, #tpu.memory_space<vmem>>, vector<4x512xf32>
    %c6_113 = arith.constant 6 : index
    %c0_114 = arith.constant 0 : index
    %c0_115 = arith.constant 0 : index
    %122 = vector.load %arg2[%c6_113, %c0_114, %c0_115] : memref<9x1x512xf32, #tpu.memory_space<vmem>>, vector<1x1x512xf32>
    %123 = vector.shape_cast %122 : vector<1x1x512xf32> to vector<1x512xf32>
    %124 = vector.broadcast %123 : vector<1x512xf32> to vector<4x512xf32>
    %125 = arith.mulf %121, %124 : vector<4x512xf32>
    %c24_116 = arith.constant 24 : index
    %c0_117 = arith.constant 0 : index
    %126 = vector.load %arg13[%c24_116, %c0_117] : memref<36x512xf32, #tpu.memory_space<vmem>>, vector<4x512xf32>
    tpu.vector_store %arg13[%c24_116, %c0_117], %125 {strides = array<i32>} : memref<36x512xf32, #tpu.memory_space<vmem>>, vector<4x512xf32>,
    %c0_118 = arith.constant 0 : index
    %c33_119 = arith.constant 33 : index
    %127 = vector.load %arg12[%c0_118, %c33_119] : memref<4x546xf32, #tpu.memory_space<vmem>>, vector<4x512xf32>
    %c7_120 = arith.constant 7 : index
    %c0_121 = arith.constant 0 : index
    %c0_122 = arith.constant 0 : index
    %128 = vector.load %arg2[%c7_120, %c0_121, %c0_122] : memref<9x1x512xf32, #tpu.memory_space<vmem>>, vector<1x1x512xf32>
    %129 = vector.shape_cast %128 : vector<1x1x512xf32> to vector<1x512xf32>
    %130 = vector.broadcast %129 : vector<1x512xf32> to vector<4x512xf32>
    %131 = arith.mulf %127, %130 : vector<4x512xf32>
    %c28_123 = arith.constant 28 : index
    %c0_124 = arith.constant 0 : index
    %132 = vector.load %arg13[%c28_123, %c0_124] : memref<36x512xf32, #tpu.memory_space<vmem>>, vector<4x512xf32>
    tpu.vector_store %arg13[%c28_123, %c0_124], %131 {strides = array<i32>} : memref<36x512xf32, #tpu.memory_space<vmem>>, vector<4x512xf32>,
    %c0_125 = arith.constant 0 : index
    %c34_126 = arith.constant 34 : index
    %133 = vector.load %arg12[%c0_125, %c34_126] : memref<4x546xf32, #tpu.memory_space<vmem>>, vector<4x512xf32>
    %c8_127 = arith.constant 8 : index
    %c0_128 = arith.constant 0 : index
    %c0_129 = arith.constant 0 : index
    %134 = vector.load %arg2[%c8_127, %c0_128, %c0_129] : memref<9x1x512xf32, #tpu.memory_space<vmem>>, vector<1x1x512xf32>
    %135 = vector.shape_cast %134 : vector<1x1x512xf32> to vector<1x512xf32>
    %136 = vector.broadcast %135 : vector<1x512xf32> to vector<4x512xf32>
    %137 = arith.mulf %133, %136 : vector<4x512xf32>
    %c32_130 = arith.constant 32 : index
    %c0_131 = arith.constant 0 : index
    %138 = vector.load %arg13[%c32_130, %c0_131] : memref<36x512xf32, #tpu.memory_space<vmem>>, vector<4x512xf32>
    tpu.vector_store %arg13[%c32_130, %c0_131], %137 {strides = array<i32>} : memref<36x512xf32, #tpu.memory_space<vmem>>, vector<4x512xf32>,
    %c0_132 = arith.constant 0 : index
    %c0_133 = arith.constant 0 : index
    %139 = vector.load %arg6[%c0_132, %c0_133] : memref<4x36xf32, #tpu.memory_space<vmem>>, vector<4x36xf32>
    %c0_134 = arith.constant 0 : index
    %c0_135 = arith.constant 0 : index
    %140 = vector.load %arg13[%c0_134, %c0_135] : memref<36x512xf32, #tpu.memory_space<vmem>>, vector<36x512xf32>
    %cst_136 = arith.constant dense<0.000000e+00> : vector<4x512xf32>
    %141 = tpu.matmul %139, %140, %cst_136 {dimension_numbers = #tpu.dot_dimension_numbers<[1], [0], [0], [1], [0, 0, 1, 1], [], []>} : vector<4x36xf32>, vector<36x512xf32>, vector<4x512xf32> -> vector<4x512xf32>
    %cst_137 = arith.constant dense<0.000000e+00> : vector<4xf32>
    %142 = vector.multi_reduction <add>, %141, %cst_137 [1] : vector<4x512xf32> to vector<4xf32>
    %143 = vector.shape_cast %142 : vector<4xf32> to vector<4x1xf32>
    %cst_138 = arith.constant 5.120000e+02 : f32
    %144 = vector.broadcast %cst_138 : f32 to vector<4x1xf32>
    %145 = arith.divf %143, %144 : vector<4x1xf32>
    %146 = vector.broadcast %145 : vector<4x1xf32> to vector<4x512xf32>
    %147 = arith.subf %141, %146 : vector<4x512xf32>
    %148 = arith.mulf %147, %147 : vector<4x512xf32>
    %cst_139 = arith.constant dense<0.000000e+00> : vector<4xf32>
    %149 = vector.multi_reduction <add>, %148, %cst_139 [1] : vector<4x512xf32> to vector<4xf32>
    %150 = vector.shape_cast %149 : vector<4xf32> to vector<4x1xf32>
    %cst_140 = arith.constant 5.120000e+02 : f32
    %151 = vector.broadcast %cst_140 : f32 to vector<4x1xf32>
    %152 = arith.divf %150, %151 : vector<4x1xf32>
    %c0_141 = arith.constant 0 : index
    %c0_142 = arith.constant 0 : index
    %153 = vector.load %arg7[%c0_141, %c0_142] : memref<4x1xf32, #tpu.memory_space<vmem>>, vector<4x1xf32>
    %cst_143 = arith.constant 9.99999974E-6 : f32
    %154 = vector.broadcast %cst_143 : f32 to vector<4x1xf32>
    %155 = arith.addf %152, %154 : vector<4x1xf32>
    %156 = math.rsqrt %155 : vector<4x1xf32>
    %157 = arith.mulf %153, %156 : vector<4x1xf32>
    %c0_144 = arith.constant 0 : index
    %c0_145 = arith.constant 0 : index
    %158 = vector.load %arg8[%c0_144, %c0_145] : memref<4x1xf32, #tpu.memory_space<vmem>>, vector<4x1xf32>
    %159 = arith.mulf %145, %157 : vector<4x1xf32>
    %160 = arith.subf %158, %159 : vector<4x1xf32>
    %161 = vector.broadcast %157 : vector<4x1xf32> to vector<4x512xf32>
    %162 = arith.mulf %141, %161 : vector<4x512xf32>
    %163 = vector.broadcast %160 : vector<4x1xf32> to vector<4x512xf32>
    %164 = arith.addf %162, %163 : vector<4x512xf32>
    %165 = arith.addf %164, %0 : vector<4x512xf32>
    %cst_146 = arith.constant 0.000000e+00 : f32
    %166 = vector.broadcast %cst_146 : f32 to vector<4x512xf32>
    %167 = arith.maximumf %165, %166 : vector<4x512xf32>
    %c0_147 = arith.constant 0 : index
    %c0_148 = arith.constant 0 : index
    %168 = vector.load %arg9[%c0_147, %c0_148] : memref<4x512xf32, #tpu.memory_space<vmem>>, vector<4x512xf32>
    tpu.vector_store %arg9[%c0_147, %c0_148], %167 {strides = array<i32>} : memref<4x512xf32, #tpu.memory_space<vmem>>, vector<4x512xf32>,
    return
  }
  func.func @transform_0(%arg0: i32) -> (i32, i32) {
    %c0_i32 = arith.constant 0 : i32
    %c0_i32_0 = arith.constant 0 : i32
    %c0_i32_1 = arith.constant 0 : i32
    return %c0_i32, %c0_i32_0 : i32, i32
  }
  func.func @transform_1(%arg0: i32) -> (i32, i32, i32) {
    %c0_i32 = arith.constant 0 : i32
    %c0_i32_0 = arith.constant 0 : i32
    %c0_i32_1 = arith.constant 0 : i32
    %c0_i32_2 = arith.constant 0 : i32
    return %c0_i32, %c0_i32_0, %c0_i32_1 : i32, i32, i32
  }
  func.func @transform_2(%arg0: i32) -> (i32, i32) {
    %c0_i32 = arith.constant 0 : i32
    %c0_i32_0 = arith.constant 0 : i32
    %c0_i32_1 = arith.constant 0 : i32
    return %c0_i32, %c0_i32_0 : i32, i32
  }
  func.func @transform_3(%arg0: i32) -> (i32, i32) {
    %c0_i32 = arith.constant 0 : i32
    %c0_i32_0 = arith.constant 0 : i32
    %c0_i32_1 = arith.constant 0 : i32
    return %c0_i32, %c0_i32_0 : i32, i32
  }
  func.func @transform_4(%arg0: i32) -> (i32, i32) {
    %c0_i32 = arith.constant 0 : i32
    %c0_i32_0 = arith.constant 0 : i32
    %c0_i32_1 = arith.constant 0 : i32
    return %c0_i32, %c0_i32_0 : i32, i32
  }
  func.func @transform_5(%arg0: i32) -> (i32, i32) {
    %c0_i32 = arith.constant 0 : i32
    %c0_i32_0 = arith.constant 0 : i32
    %c0_i32_1 = arith.constant 0 : i32
    return %c0_i32, %c0_i32_0 : i32, i32
  }
  func.func @transform_6(%arg0: i32) -> (i32, i32) {
    %c0_i32 = arith.constant 0 : i32
    %c0_i32_0 = arith.constant 0 : i32
    %c0_i32_1 = arith.constant 0 : i32
    return %c0_i32, %c0_i32_0 : i32, i32
  }
  func.func @transform_7(%arg0: i32) -> (i32, i32) {
    %c0_i32 = arith.constant 0 : i32
    %c0_i32_0 = arith.constant 0 : i32
    %c0_i32_1 = arith.constant 0 : i32
    return %c0_i32, %c0_i32_0 : i32, i32
  }
  func.func @transform_8(%arg0: i32) -> (i32, i32) {
    %c0_i32 = arith.constant 0 : i32
    %c0_i32_0 = arith.constant 0 : i32
    %c0_i32_1 = arith.constant 0 : i32
    return %c0_i32, %c0_i32_0 : i32, i32
  }
}

</mosaic_0001>

<bundles_post_ra>
// kernel: tpu_custom_call.1
= control target key start
LH: loop header
LB: loop body
LE: loop exit
PB: predicated region body
PF: predicated region fallthrough
CT: control target
= control target key end

     0   :  { %13 = vsyncpa [#allocation7], 0  ;;  %s2468_s0 = inlined_call_operand.vmem [shape: f32[4,512], index: 0, kind: input, shape index: {}]   ;;  %s2469_s1 = inlined_call_operand.hbm [shape: f32[9,1,512], index: 1, kind: input, shape index: {}]   ;;  %s2470_s2 = inlined_call_operand.vmem [shape: f32[4,36], index: 2, kind: input, shape index: {}]   ;;  %s2471_s3 = inlined_call_operand.vmem [shape: f32[4,1], index: 3, kind: input, shape index: {}]   ;;  %s2472_s4 = inlined_call_operand.vmem [shape: f32[4,1], index: 4, kind: input, shape index: {}]   ;;  %s2473_s5 = inlined_call_operand.vmem [shape: f32[4,36], index: 5, kind: input, shape index: {}]   ;;  %s2474_s6 = inlined_call_operand.vmem [shape: f32[4,1], index: 6, kind: input, shape index: {}]   ;;  %s2475_s7 = inlined_call_operand.vmem [shape: f32[4,1], index: 7, kind: input, shape index: {}]   ;;  %s2476_s8 = inlined_call_operand.hbm [shape: f32[4,512], index: 8, kind: output, shape index: {}]  }
   0x1   :  { %14 = vsyncpa [#allocation8], 0  ;;  %s1761_s27 = smov [#allocation6]  }
   0x2   :  { %s22_s28 = sshll.u32 %s1761_s27, 4  ;;  %s23_s28 = int_to_ptr.vmem [resolvable:$true] %s22_s28 }
   0x3   :  { %s1725_s29 = scalar_lea.vmem %s23_s28, 576  ;;  %p1730_p1 = scmp.lt.s32.totalorder %s23_s28, %s23_s28 }
   0x4   :  { %p1726_p0 = scmp.ne.s32.totalorder %s23_s28, %s1725_s29  ;;  %p1731_p2 = scmp.lt.s32.totalorder %s1725_s29, %s1725_s29 }
   0x6   :  { %p1732_p3 = por %p1731_p2, %p1730_p1 }
   0x8   :  { %p1733_p4 = pnand %p1732_p3, %p1726_p0 }
   0xa   :  { %1736 = shalt.err (!%p1733_p4)
}
   0xb   :  { %s1762_s30 = smov 64   ;;  %s1763_s9 = smov 4  }
   0xc   :  { %28 = dma.hbm_to_vmem [thread:$0]  %s2469_s1, 576, %s23_s28, [#allocation7], %s1762_s30, %s1762_s30, %s1763_s9  }
   0xd   :  { %1757 = dma.done.wait [#allocation7], 576  }
   0xe   :  { %1758 = vsyncadd [#allocation7], 4294966720  ;;  %v76_v0 = vlaneseq  ;;  %vm46_vm0 = vcmask 134144   ;;  %v1764_v1 = vmov 0.0   ;;  %vm48_vm1 = vcmask 273544   ;;  %v44_v7 = vld [vmem:[%s2468_s0] sm:$0xff] }
   0xf   :  { %47 = vst.msk [vmem:[#allocation2] sm:$0xf] %vm46_vm0, %v1764_v1  ;;  %856 = vst.msk [vmem:[#allocation4] sm:$0xf] %vm46_vm0, %v1764_v1  ;;  %720 = vmatprep.mubr.f32.mxu0 %v1764_v1  ;;  %791 = vmatprep.mubr.f32.mxu1 %v1764_v1  ;;  %v555_v8 = vld [vmem:[#allocation6 + $0x20] sm:$0xf] }
  0x10   :  { %v77_v2 = vshrl.u32 %v76_v0, 7  ;;  %49 = vst.msk [vmem:[#allocation2 + $0x10] sm:$0xf] %vm48_vm1, %v1764_v1  ;;  %857 = vst.msk [vmem:[#allocation4 + $0x10] sm:$0xf] %vm48_vm1, %v1764_v1  ;;  %s1765_s13 = smov 17  }
  0x11   :  { %52 = vrot.lane.b32.xlu0 %v44_v7, %s1765_s13  ;;  %v486_v11 = vld [vmem:[#allocation6 + $0x1c] sm:$0xf]  ;;  %v418_v12 = vld [vmem:[#allocation6 + $0x18] sm:$0xf]  ;;  %v45_v13 = vld [vmem:[%s2468_s0 + $0x8] sm:$0xff]  ;;  %s1766_s16 = smov 34  }
  0x12   :  { %v1839_v3 = vsub.s32 0, %v77_v2  ;;  %v1841_v4 = vsub.s32 1, %v77_v2  ;;  %v1843_v5 = vsub.s32 2, %v77_v2  ;;  %v1845_v6 = vsub.s32 3, %v77_v2  ;;  %v349_v25 = vld [vmem:[#allocation6 + $0x14] sm:$0xf] }
  0x13   :  { %s1767_s17 = smov 33   ;;  %v249_v32 = vld [vmem:[#allocation6 + $0xc] sm:$0xf]  ;;  %s1768_s18 = smov 32   ;;  %v181_v39 = vld [vmem:[#allocation6 + $0x8] sm:$0xf] }
  0x14   :  { %v560_v9 = vrot.slane %v555_v8, %v1839_v3  ;;  %v564_v10 = vrot.slane %v555_v8, %v1841_v4  ;;  %v491_v14 = vrot.slane %v486_v11, %v1839_v3  ;;  %v495_v15 = vrot.slane %v486_v11, %v1841_v4  ;;  %s1769_s19 = smov 18   ;;  %v112_v46 = vld [vmem:[#allocation6 + $0x4] sm:$0xf]  ;;  %s1770_s20 = smov 16   ;;  %v74_v58 = vld [vmem:[#allocation6] sm:$0xf] }
  0x15   :  { %v499_v16 = vrot.slane %v486_v11, %v1843_v5  ;;  %v503_v17 = vrot.slane %v486_v11, %v1845_v6  ;;  %v568_v19 = vrot.slane %v555_v8, %v1843_v5  ;;  %v572_v20 = vrot.slane %v555_v8, %v1845_v6  ;;  %54 = vrot.lane.b32.xlu0 %v45_v13, %s1765_s13  ;;  %s1771_s21 = smov 2   ;;  %s1772_s22 = smov 1  }
  0x16   :  { %v573_v18 = vcombine.low %v560_v9, %v564_v10  ;;  %v423_v21 = vrot.slane %v418_v12, %v1839_v3  ;;  %v504_v22 = vcombine.low %v491_v14, %v495_v15  ;;  %v427_v24 = vrot.slane %v418_v12, %v1841_v4  ;;  %s1773_s23 = smov 111   ;;  %s1774_s24 = smov 94  }
  0x17   :  { %v505_v23 = vcombine.low %v499_v16, %v503_v17  ;;  %v574_v26 = vcombine.low %v568_v19, %v572_v20  ;;  %v354_v27 = vrot.slane %v349_v25, %v1839_v3  ;;  %v358_v28 = vrot.slane %v349_v25, %v1841_v4  ;;  %s1775_s25 = smov 96   ;;  %s1776_s26 = smov 126  }
  0x18   :  { %575 = vrot.lane.b32.xlu1 %v573_v18, %s1766_s16  ;;  %v436_v29 = vcombine.low %v423_v21, %v427_v24  ;;  %v362_v30 = vrot.slane %v349_v25, %v1843_v5  ;;  %v366_v31 = vrot.slane %v349_v25, %v1845_v6  ;;  %v431_v34 = vrot.slane %v418_v12, %v1843_v5  ;;  %s1777_s27 = smov 95   ;;  %s1778_s28 = smov 110  }
  0x19   :  { %508 = vrot.lane.b32.xlu0 %v505_v23, %s1767_s17  ;;  %v367_v33 = vcombine.low %v354_v27, %v358_v28  ;;  %v435_v35 = vrot.slane %v418_v12, %v1845_v6  ;;  %v254_v37 = vrot.slane %v249_v32, %v1839_v3  ;;  %v258_v38 = vrot.slane %v249_v32, %v1841_v4  ;;  %s1779_s29 = smov 112   ;;  %s1780_s30 = smov 127  }
  0x1a   :  { %v368_v36 = vcombine.low %v362_v30, %v366_v31  ;;  %v262_v41 = vrot.slane %v249_v32, %v1843_v5  ;;  %v266_v42 = vrot.slane %v249_v32, %v1845_v6  ;;  %v186_v44 = vrot.slane %v181_v39, %v1839_v3 }
  0x1b   :  { %v437_v40 = vcombine.low %v431_v34, %v435_v35  ;;  %v267_v43 = vcombine.low %v254_v37, %v258_v38  ;;  %v190_v45 = vrot.slane %v181_v39, %v1841_v4  ;;  %v117_v48 = vrot.slane %v112_v46, %v1839_v3 }
  0x1c   :  { %506 = vrot.lane.b32.xlu1 %v504_v22, %s1767_s17  ;;  %v268_v47 = vcombine.low %v262_v41, %v266_v42  ;;  %v121_v49 = vrot.slane %v112_v46, %v1841_v4  ;;  %v125_v51 = vrot.slane %v112_v46, %v1843_v5  ;;  %v129_v52 = vrot.slane %v112_v46, %v1845_v6 }
  0x1d   :  { %438 = vrot.lane.b32.xlu0 %v436_v29, %s1768_s18  ;;  %v199_v50 = vcombine.low %v186_v44, %v190_v45  ;;  %v194_v53 = vrot.slane %v181_v39, %v1843_v5  ;;  %v198_v56 = vrot.slane %v181_v39, %v1845_v6  ;;  %vm66_vm2 = vcmask 1043592  }
  0x1e   :  { %v130_v54 = vcombine.low %v117_v48, %v121_v49  ;;  %v131_v55 = vcombine.low %v125_v51, %v129_v52  ;;  %vm67_vm3 = vcmask 1047556   ;;  %vm58_vm4 = vcmask 138240  }
  0x1f   :  { %v200_v57 = vcombine.low %v194_v53, %v198_v56  ;;  %vm1897_vm5 = vmor %vm67_vm3, %vm66_vm2  ;;  %v87_v62 = vrot.slane %v74_v58, %v1843_v5  ;;  %v91_v63 = vrot.slane %v74_v58, %v1845_v6  ;;  %vm60_vm6 = vcmask 1043456  }
  0x20   :  { %577 = vrot.lane.b32.xlu1 %v574_v26, %s1766_s16  ;;  %v79_v10 = vrot.slane %v74_v58, %v1839_v3  ;;  %v83_v11 = vrot.slane %v74_v58, %v1841_v4  ;;  %vm581_vm7 = vcmask 277504   ;;  %vm444_vm8 = vcmask 261120  }
  0x21   :  { %371 = vrot.lane.b32.xlu0 %v368_v36, %s1769_s19  ;;  %v93_v8 = vcombine.low %v87_v62, %v91_v63  ;;  %vm512_vm9 = vcmask 269312   ;;  %vm207_vm10 = vcmask 15360   ;;  %vm275_vm11 = vcmask 130048  }
  0x22   :  { %v92_v17 = vcombine.low %v79_v10, %v83_v11  ;;  %vm375_vm12 = vcmask 146432   ;;  %vm2479_vm13 = vcmask 7168   ;;  %vm2478_vm14 = vcmask 908288  }
  0x23   :  { %vm606_vm15 = vcmask 769024   ;;  %vm2477_vm1 = vcmask 777216   ;;  %vm401_vm2 = vcmask 900096   ;;  %vm301_vm3 = vcmask 916480  }
  0x24   :  { %369 = vrot.lane.b32.xlu1 %v367_v33, %s1769_s19 }
  0x25   :  { %269 = vrot.lane.b32.xlu0 %v267_v43, %s1770_s20 }
  0x28   :  { %440 = vrot.lane.b32.xlu1 %v437_v40, %s1768_s18 }
  0x29   :  { %201 = vrot.lane.b32.xlu0 %v199_v50, %s1771_s21 }
  0x2c   :  { %271 = vrot.lane.b32.xlu1 %v268_v47, %s1770_s20 }
  0x2d   :  { %134 = vrot.lane.b32.xlu0 %v131_v55, %s1772_s22 }
  0x30   :  { %132 = vrot.lane.b32.xlu1 %v130_v54, %s1772_s22 }
  0x34   :  { %203 = vrot.lane.b32.xlu1 %v200_v57, %s1771_s21 }
  0x83   :  { %v53_v59 = vpop.permute.xlu0 %52 }
  0x84   :  { %v56_v61 = vrot.slane %v53_v59, 4 }
  0x86   :  { %v59_v0 = vsel %vm58_vm4, %v56_v61, %v53_v59 }
  0x87   :  { %69 = vst.msk [vmem:[#allocation2] sm:$0xff] %vm1897_vm5, %v59_v0  ;;  %v55_v7 = vpop.permute.xlu0 %54 }
  0x88   :  { %v57_v9 = vrot.slane %v55_v7, 4 }
  0x8a   :  { %v1906_v2 = vpop.permute.xlu1 %575  ;;  %v61_v12 = vsel %vm60_vm6, %v56_v61, %v57_v9  ;;  %71 = vst.msk [vmem:[#allocation2 + $0x10] sm:$0xf] %vm46_vm0, %v57_v9 }
  0x8b   :  { %v1913_v13 = vsel %vm58_vm4, %v61_v12, %v55_v7  ;;  %v1917_v15 = vpop.permute.xlu0 %508  ;;  %v579_v34 = vrot.slane %v1906_v2, 4 }
  0x8c   :  { %v97_v16 = vmul.f32 %v93_v8, %v1913_v13  ;;  %v511_v51 = vrot.slane %v1917_v15, 4 }
  0x8d   :  { %v582_v39 = vsel %vm581_vm7, %v579_v34, %v1906_v2 }
  0x8e   :  { %v1915_v14 = vpop.permute.xlu1 %506  ;;  %106 = vst [vmem:[#allocation3 + $0x50] sm:$0xf] %v97_v16  ;;  %v1920_v18 = vld [vmem:[#allocation2] sm:$0xff]  ;;  %v101_v19 = vcombine.high %v97_v16, %v97_v16 }
  0x8f   :  { %v1924_v21 = vpop.permute.xlu0 %438  ;;  %322 = vrot.lane.b32.xlu1 %v1920_v18, %s1773_s23  ;;  %v96_v22 = vmul.f32 %v1920_v18, %v92_v17  ;;  %v588_v41 = vmul.f32 %v582_v39, %v1920_v18  ;;  %v510_v44 = vrot.slane %v1915_v14, 4  ;;  %v320_v16 = vcombine.high %v1920_v18, %v1920_v18 }
  0x90   :  { %107 = vst [vmem:[#allocation3 + $0x18] sm:$0xf] %v101_v19  ;;  %v442_v33 = vrot.slane %v1924_v21, 4 }
  0x91   :  { %v316_v23 = vld [vmem:[#allocation2 + $0x10] sm:$0xf]  ;;  %104 = vst [vmem:[#allocation3] sm:$0xf] %v96_v22  ;;  %v100_v25 = vcombine.high %v96_v22, %v96_v22  ;;  %v513_v54 = vsel %vm512_vm9, %v510_v44, %v1915_v14 }
  0x92   :  { %v1922_v20 = vpop.permute.xlu1 %577  ;;  %330 = vrot.lane.b32.xlu0 %v316_v23, %s1773_s23  ;;  %v553_v28 = vld [vmem:[#allocation2 + $0x10] sm:$0xf]  ;;  %v519_v63 = vmul.f32 %v513_v54, %v1920_v18  ;;  %v445_v0 = vsel %vm444_vm8, %v442_v33, %v1924_v21  ;;  %v594_v23 = vcombine.high %v588_v41, %v588_v41 }
  0x93   :  { %v580_v26 = vrot.slane %v1922_v20, 4  ;;  %v1933_v27 = vpop.permute.xlu0 %371  ;;  %105 = vst [vmem:[#allocation3 + $0x38] sm:$0xf] %v100_v25  ;;  %v416_v32 = vld [vmem:[#allocation2 + $0x10] sm:$0xf]  ;;  %v1986_v10 = vmul.f32 %v445_v0, %v1920_v18 }
  0x94   :  { %v179_v49 = vld [vmem:[#allocation2 + $0x10] sm:$0xf]  ;;  %v374_v59 = vrot.slane %v1933_v27, 4 }
  0x95   :  { %v590_v31 = vmul.f32 %v580_v26, %v553_v28  ;;  %v484_v50 = vld [vmem:[#allocation2 + $0x10] sm:$0xf] }
  0x96   :  { %v1930_v24 = vpop.permute.xlu1 %369  ;;  %326 = vrot.lane.b32.xlu0 %v1913_v13, %s1773_s23  ;;  %v521_v57 = vmul.f32 %v511_v51, %v484_v50  ;;  %v347_v58 = vld [vmem:[#allocation2 + $0x10] sm:$0xf]  ;;  %v457_v50 = vcombine.high %v1986_v10, %v1986_v10 }
  0x97   :  { %v1942_v35 = vpop.permute.xlu0 %269  ;;  %v384_v8 = vmul.f32 %v374_v59, %v347_v58  ;;  %v373_v11 = vrot.slane %v1930_v24, 4  ;;  %v247_v54 = vld [vmem:[#allocation2 + $0x10] sm:$0xf] }
  0x98   :  { %v273_v61 = vrot.slane %v1942_v35, 4  ;;  %v527_v7 = vcombine.low %v521_v57, %v521_v57  ;;  %v110_v57 = vld [vmem:[#allocation2 + $0x10] sm:$0xf] }
  0x99   :  { %v390_v12 = vcombine.low %v384_v8, %v384_v8  ;;  %v376_v17 = vsel %vm375_vm12, %v373_v11, %v1930_v24 }
  0x9a   :  { %v441_v29 = vpop.permute.xlu1 %440  ;;  %604 = vrot.lane.b32.xlu0 %v590_v31, %s1774_s24  ;;  %v382_v21 = vmul.f32 %v376_v17, %v1920_v18  ;;  %v276_v22 = vsel %vm275_vm11, %v273_v61, %v1942_v35 }
  0x9b   :  { %v443_v30 = vrot.slane %v441_v29, 4  ;;  %v202_v43 = vpop.permute.xlu0 %201  ;;  %v282_v25 = vmul.f32 %v1920_v18, %v276_v22 }
  0x9c   :  { %v205_v46 = vrot.slane %v202_v43, 4  ;;  %v388_v35 = vcombine.low %v382_v21, %v382_v21 }
  0x9d   :  { %v453_v37 = vmul.f32 %v443_v30, %v416_v32  ;;  %v446_v38 = vsel %vm60_vm6, %v442_v33, %v443_v30  ;;  %v514_v30 = vsel %vm60_vm6, %v510_v44, %v511_v51  ;;  %v583_v33 = vsel %vm60_vm6, %v579_v34, %v580_v26 }
  0x9e   :  { %v1944_v36 = vpop.permute.xlu1 %271  ;;  %v447_v42 = vsel %vm444_vm8, %v446_v38, %v441_v29  ;;  %v208_v24 = vsel %vm207_vm10, %v205_v46, %v202_v43  ;;  %v525_v29 = vcombine.low %v519_v63, %v519_v63  ;;  %v377_v38 = vsel %vm60_vm6, %v373_v11, %v374_v59 }
  0x9f   :  { %467 = vrot.lane.b32.xlu0 %v453_v37, %s1775_s25  ;;  %v1959_v48 = vmul.f32 %v447_v42, %v1913_v13  ;;  %v274_v62 = vrot.slane %v1944_v36, 4  ;;  %v214_v31 = vmul.f32 %v1920_v18, %v208_v24  ;;  %v515_v37 = vsel %vm512_vm9, %v514_v30, %v1917_v15 }
  0xa0   :  { %v520_v2 = vmul.f32 %v515_v37, %v1913_v13  ;;  %v288_v26 = vcombine.low %v282_v25, %v282_v25  ;;  %v378_v34 = vsel %vm375_vm12, %v377_v38, %v1933_v27  ;;  %v321_v27 = vcombine.high %v1913_v13, %v1913_v13 }
  0xa1   :  { %v277_v9 = vsel %vm60_vm6, %v273_v61, %v274_v62 }
  0xa2   :  { %v1952_v40 = vpop.permute.xlu1 %132  ;;  %v278_v14 = vsel %vm275_vm11, %v277_v9, %v1944_v36 }
  0xa3   :  { %596 = vrot.lane.b32.xlu0 %v588_v41, %s1774_s24  ;;  %v283_v19 = vmul.f32 %v278_v14, %v1913_v13  ;;  %v136_v28 = vrot.slane %v1952_v40, 4  ;;  %v135_v41 = vpop.permute.xlu0 %134 }
  0xa4   :  { %v137_v15 = vrot.slane %v135_v41, 4 }
  0xa5   :  { %v139_v32 = vsel %vm2479_vm13, %v136_v28, %v1952_v40  ;;  %v584_v40 = vsel %vm581_vm7, %v583_v33, %v1922_v20  ;;  %v526_v20 = vcombine.low %v520_v2, %v520_v2 }
  0xa6   :  { %v204_v45 = vpop.permute.xlu1 %203  ;;  %v145_v39 = vmul.f32 %v1920_v18, %v139_v32  ;;  %v589_v42 = vmul.f32 %v584_v40, %v1913_v13  ;;  %v383_v18 = vmul.f32 %v378_v34, %v1913_v13  ;;  %v140_v43 = vsel %vm60_vm6, %v136_v28, %v137_v15 }
  0xa7   :  { %v206_v47 = vrot.slane %v204_v45, 4  ;;  %463 = vrot.lane.b32.xlu0 %v1959_v48, %s1775_s25  ;;  %v147_v59 = vmul.f32 %v137_v15, %v110_v57 }
  0xa8   :  { %v389_v44 = vcombine.low %v383_v18, %v383_v18 }
  0xa9   :  { %v209_v52 = vsel %vm60_vm6, %v205_v46, %v206_v47  ;;  %v216_v53 = vmul.f32 %v206_v47, %v179_v49  ;;  %v289_v47 = vcombine.low %v283_v19, %v283_v19  ;;  %v153_v61 = vcombine.low %v147_v59, %v147_v59 }
  0xaa   :  { %v210_v55 = vsel %vm207_vm10, %v209_v52, %v204_v45  ;;  %v141_v45 = vsel %vm2479_vm13, %v140_v43, %v135_v41  ;;  %v151_v52 = vcombine.low %v145_v39, %v145_v39  ;;  %vm2480_vm13 = vcmask 1031168  }
  0xab   :  { %230 = vrot.lane.b32.xlu1 %v216_v53, %s1776_s26  ;;  %v1970_v56 = vmul.f32 %v210_v55, %v1913_v13  ;;  %v146_v46 = vmul.f32 %v141_v45, %v1913_v13  ;;  %v220_v13 = vcombine.high %v214_v31, %v214_v31  ;;  %v595_v53 = vcombine.high %v589_v42, %v589_v42 }
  0xac   :  { %v458_v55 = vcombine.high %v1959_v48, %v1959_v48 }
  0xad   :  { %226 = vrot.lane.b32.xlu0 %v1970_v56, %s1776_s26  ;;  %v152_v49 = vcombine.low %v146_v46, %v146_v46  ;;  %v221_v51 = vcombine.high %v1970_v56, %v1970_v56  ;;  %v284_v56 = vmul.f32 %v274_v62, %v247_v54 }
  0xaf   :  { %530 = vrot.lane.b32.xlu1 %v519_v63, %s1777_s27  ;;  %v290_v58 = vcombine.low %v284_v56, %v284_v56 }
  0xb1   :  { %536 = vrot.lane.b32.xlu0 %v527_v7, %s1777_s27 }
  0xb3   :  { %459 = vrot.lane.b32.xlu1 %v1986_v10, %s1775_s25 }
  0xb5   :  { %399 = vrot.lane.b32.xlu0 %v390_v12, %s1778_s28 }
  0xb7   :  { %324 = vrot.lane.b32.xlu1 %v320_v16, %s1773_s23 }
  0xb9   :  { %297 = vrot.lane.b32.xlu0 %v283_v19, %s1779_s29 }
  0xbb   :  { %393 = vrot.lane.b32.xlu1 %v382_v21, %s1778_s28 }
  0xbd   :  { %598 = vrot.lane.b32.xlu0 %v594_v23, %s1774_s24 }
  0xbf   :  { %293 = vrot.lane.b32.xlu1 %v282_v25, %s1779_s29 }
  0xc1   :  { %528 = vrot.lane.b32.xlu0 %v525_v29, %s1777_s27 }
  0xc3   :  { %222 = vrot.lane.b32.xlu1 %v214_v31, %s1776_s26 }
  0xc5   :  { %391 = vrot.lane.b32.xlu0 %v388_v35, %s1778_s28 }
  0xc7   :  { %156 = vrot.lane.b32.xlu1 %v145_v39, %s1780_s30 }
  0xc9   :  { %291 = vrot.lane.b32.xlu0 %v288_v26, %s1779_s29 }
  0xcb   :  { %600 = vrot.lane.b32.xlu1 %v589_v42, %s1774_s24 }
  0xcd   :  { %532 = vrot.lane.b32.xlu0 %v526_v20, %s1777_s27 }
  0xcf   :  { %534 = vrot.lane.b32.xlu1 %v520_v2, %s1777_s27 }
  0xd1   :  { %395 = vrot.lane.b32.xlu0 %v389_v44, %s1778_s28 }
  0xd3   :  { %328 = vrot.lane.b32.xlu1 %v321_v27, %s1773_s23 }
  0xd5   :  { %295 = vrot.lane.b32.xlu0 %v289_v47, %s1779_s29 }
  0xd7   :  { %397 = vrot.lane.b32.xlu1 %v383_v18, %s1778_s28 }
  0xd9   :  { %158 = vrot.lane.b32.xlu0 %v152_v49, %s1780_s30 }
  0xdb   :  { %461 = vrot.lane.b32.xlu1 %v457_v50, %s1775_s25 }
  0xdd   :  { %228 = vrot.lane.b32.xlu0 %v221_v51, %s1776_s26 }
  0xdf   :  { %224 = vrot.lane.b32.xlu1 %v220_v13, %s1776_s26 }
  0xe1   :  { %160 = vrot.lane.b32.xlu0 %v146_v46, %s1780_s30 }
  0xe3   :  { %154 = vrot.lane.b32.xlu1 %v151_v52, %s1780_s30 }
  0xe7   :  { %602 = vrot.lane.b32.xlu1 %v595_v53, %s1774_s24 }
  0xeb   :  { %465 = vrot.lane.b32.xlu1 %v458_v55, %s1775_s25 }
  0xef   :  { %299 = vrot.lane.b32.xlu1 %v290_v58, %s1779_s29 }
  0xf3   :  { %162 = vrot.lane.b32.xlu1 %v153_v61, %s1780_s30 }
 0x101   :  { %v323_v9 = vpop.permute.xlu1 %322 }
 0x104   :  { %v331_v63 = vpop.permute.xlu0 %330 }
 0x108   :  { %v327_v0 = vpop.permute.xlu0 %326 }
 0x10c   :  { %v2065_v7 = vpop.permute.xlu0 %604 }
 0x111   :  { %v2067_v8 = vpop.permute.xlu0 %467 }
 0x115   :  { %v597_v48 = vpop.permute.xlu0 %596 }
 0x119   :  { %v2069_v36 = vpop.permute.xlu0 %463 }
 0x11d   :  { %v2071_v62 = vpop.permute.xlu1 %230 }
 0x11f   :  { %v2073_v10 = vpop.permute.xlu0 %226 }
 0x121   :  { %v531_v11 = vpop.permute.xlu1 %530 }
 0x123   :  { %v537_v12 = vpop.permute.xlu0 %536 }
 0x125   :  { %v2075_v14 = vpop.permute.xlu1 %459 }
 0x127   :  { %v400_v16 = vpop.permute.xlu0 %399 }
 0x129   :  { %v325_v17 = vpop.permute.xlu1 %324 }
 0x12a   :  { %v333_v19 = vsel %vm2478_vm14, %v323_v9, %v325_v17  ;;  %v334_v21 = vsel %vm2478_vm14, %v325_v17, %v327_v0 }
 0x12b   :  { %341 = vst [vmem:[#allocation3 + $0x8] sm:$0xf] %v333_v19  ;;  %342 = vst [vmem:[#allocation3 + $0x88] sm:$0xf] %v334_v21  ;;  %v2079_v22 = vpop.permute.xlu0 %297 }
 0x12d   :  { %v394_v23 = vpop.permute.xlu1 %393 }
 0x12f   :  { %v599_v25 = vpop.permute.xlu0 %598 }
 0x130   :  { %v607_v24 = vsel %vm606_vm15, %v597_v48, %v599_v25 }
 0x131   :  { %615 = vst [vmem:[#allocation3 + $0x20] sm:$0xf] %v607_v24  ;;  %v294_v28 = vpop.permute.xlu1 %293 }
 0x133   :  { %v529_v29 = vpop.permute.xlu0 %528 }
 0x134   :  { %v539_v30 = vsel %vm2477_vm1, %v529_v29, %v531_v11  ;;  %v619_v29 = vld [vmem:[%s2470_s2] sm:$0xf] }
 0x135   :  { %547 = vst [vmem:[#allocation3 + $0x58] sm:$0xf0] %v539_v30  ;;  %v223_v31 = vpop.permute.xlu1 %222 }
 0x137   :  { %v392_v32 = vpop.permute.xlu0 %391 }
 0x138   :  { %v402_v33 = vsel %vm401_vm2, %v392_v32, %v394_v23  ;;  %v636_v46 = vld [vmem:[#allocation3 + $0x20] sm:$0xf] }
 0x139   :  { %410 = vst [vmem:[#allocation3 + $0x8] sm:$0xf0] %v402_v33  ;;  %v2084_v35 = vpop.permute.xlu1 %156 }
 0x13b   :  { %v292_v37 = vpop.permute.xlu0 %291 }
 0x13c   :  { %v302_v38 = vsel %vm301_vm3, %v292_v37, %v294_v28 }
 0x13d   :  { %310 = vst [vmem:[#allocation3 + $0x30] sm:$0xf0] %v302_v38  ;;  %v2087_v39 = vpop.permute.xlu1 %600 }
 0x13e   :  { %v608_v40 = vsel %vm606_vm15, %v599_v25, %v2087_v39 }
 0x13f   :  { %616 = vst [vmem:[#allocation3 + $0x48] sm:$0xf] %v608_v40  ;;  %v533_v41 = vpop.permute.xlu0 %532 }
 0x140   :  { %v540_v2 = vsel %vm2477_vm1, %v531_v11, %v533_v41  ;;  %v628_v19 = vld [vmem:[#allocation3 + $0x8] sm:$0xff] }
 0x141   :  { %548 = vst [vmem:[#allocation3 + $0x10] sm:$0xf0] %v540_v2  ;;  %v535_v26 = vpop.permute.xlu1 %534 }
 0x142   :  { %v541_v34 = vsel %vm2477_vm1, %v533_v41, %v535_v26  ;;  %v542_v15 = vsel %vm2477_vm1, %v535_v26, %v537_v12  ;;  %vm164_vm1 = vcmask 1039360  }
 0x143   :  { %549 = vst [vmem:[#allocation3 + $0x98] sm:$0xf0] %v541_v34  ;;  %550 = vst [vmem:[#allocation3 + $0x60] sm:$0xf0] %v542_v15  ;;  %v396_v42 = vpop.permute.xlu0 %395 }
 0x144   :  { %v403_v18 = vsel %vm401_vm2, %v394_v23, %v396_v42 }
 0x145   :  { %411 = vst [vmem:[#allocation3 + $0x88] sm:$0xf0] %v403_v18  ;;  %v329_v20 = vpop.permute.xlu1 %328 }
 0x146   :  { %v335_v43 = vsel %vm2478_vm14, %v327_v0, %v329_v20  ;;  %v336_v44 = vsel %vm2478_vm14, %v329_v20, %v331_v63  ;;  %v637_v45 = vld [vmem:[#allocation3 + $0x48] sm:$0xf]  ;;  %vm469_vm14 = vcmask 785408  }
 0x147   :  { %343 = vst [vmem:[#allocation3 + $0x28] sm:$0xf] %v335_v43  ;;  %344 = vst [vmem:[#allocation3 + $0x40] sm:$0xf] %v336_v44  ;;  %1672 = vmatprep.subr.msk.mxu0 %vm60_vm6, %v637_v45  ;;  %v296_v27 = vpop.permute.xlu0 %295 }
 0x148   :  { %v303_v47 = vsel %vm301_vm3, %v294_v28, %v296_v27  ;;  %v304_v49 = vsel %vm301_vm3, %v296_v27, %v2079_v22  ;;  %1673 = vmatpush1.msk.msra.mxu0 %vm60_vm6, %v636_v46 }
 0x149   :  { %311 = vst [vmem:[#allocation3 + $0x68] sm:$0xf0] %v303_v47  ;;  %312 = vst [vmem:[#allocation3 + $0x78] sm:$0xf0] %v304_v49  ;;  %v398_v50 = vpop.permute.xlu1 %397 }
 0x14a   :  { %v404_v51 = vsel %vm401_vm2, %v396_v42, %v398_v50  ;;  %v405_v13 = vsel %vm401_vm2, %v398_v50, %v400_v16 }
 0x14b   :  { %412 = vst [vmem:[#allocation3 + $0x28] sm:$0xf0] %v404_v51  ;;  %413 = vst [vmem:[#allocation3 + $0x40] sm:$0xf0] %v405_v13  ;;  %v159_v52 = vpop.permute.xlu0 %158 }
 0x14c   :  { %v166_v53 = vsel %vm164_vm1, %v2084_v35, %v159_v52  ;;  %v629_v16 = vld [vmem:[#allocation3 + $0x88] sm:$0xff] }
 0x14d   :  { %174 = vst [vmem:[#allocation3 + $0x38] sm:$0xf0] %v166_v53  ;;  %v462_v54 = vpop.permute.xlu1 %461 }
 0x14e   :  { %v470_v55 = vsel %vm469_vm14, %v2075_v14, %v462_v54  ;;  %v471_v56 = vsel %vm469_vm14, %v462_v54, %v2069_v36 }
 0x14f   :  { %478 = vst [vmem:[#allocation3 + $0x58] sm:$0xf] %v470_v55  ;;  %479 = vst [vmem:[#allocation3 + $0x10] sm:$0xf] %v471_v56  ;;  %v229_v57 = vpop.permute.xlu0 %228 }
 0x150   :  { %v235_v58 = vsel %vm2480_vm13, %v2073_v10, %v229_v57  ;;  %v236_v59 = vsel %vm2480_vm13, %v229_v57, %v2071_v62 }
 0x151   :  { %243 = vst [vmem:[#allocation3 + $0x78] sm:$0xf] %v235_v58  ;;  %244 = vst [vmem:[#allocation3 + $0x80] sm:$0xf] %v236_v59  ;;  %v225_v61 = vpop.permute.xlu1 %224 }
 0x152   :  { %v233_v63 = vsel %vm2480_vm13, %v223_v31, %v225_v61  ;;  %v234_v0 = vsel %vm2480_vm13, %v225_v61, %v2073_v10  ;;  %vm640_vm13 = vcmask 293888   ;;  %v631_v40 = vld [vmem:[#allocation3 + $0x40] sm:$0xff]  ;;  %v630_v41 = vld [vmem:[#allocation3 + $0x28] sm:$0xff] }
 0x153   :  { %241 = vst [vmem:[#allocation3 + $0x30] sm:$0xf] %v233_v63  ;;  %242 = vst [vmem:[#allocation3 + $0x68] sm:$0xf] %v234_v0  ;;  %v161_v48 = vpop.permute.xlu0 %160 }
 0x154   :  { %v167_v9 = vsel %vm164_vm1, %v159_v52, %v161_v48  ;;  %v621_v24 = vld [vmem:[#allocation3 + $0x38] sm:$0xff] }
 0x155   :  { %175 = vst [vmem:[#allocation3 + $0x50] sm:$0xf0] %v167_v9  ;;  %v155_v11 = vpop.permute.xlu1 %154 }
 0x156   :  { %v165_v12 = vsel %vm164_vm1, %v155_v11, %v2084_v35  ;;  %v633_v14 = vld [vmem:[#allocation3 + $0x10] sm:$0xff]  ;;  %v632_v62 = vld [vmem:[#allocation3 + $0x58] sm:$0xff]  ;;  %v1781_v11 = vmov 0  }
 0x157   :  { %173 = vst [vmem:[#allocation3] sm:$0xf0] %v165_v12  ;;  %680 = vmatprep.subr.mxu0 %v633_v14  ;;  %1706 = vset.pattern.permute.xlu0 %v1781_v11 }
 0x158   :  { %681 = vmatpush1.msra.mxu0 %v632_v62  ;;  %v626_v2 = vld [vmem:[#allocation3 + $0x78] sm:$0xff]  ;;  %1707 = vset.pattern.permute.xlu1 %v1781_v11 }
 0x159   :  { %v603_v17 = vpop.permute.xlu1 %602  ;;  %682 = vmatprep.subr.mxu0 %v629_v16  ;;  %v1211_v16 = vld [vmem:[#allocation6 + $0x18] sm:$0xf] }
 0x15a   :  { %v609_v10 = vsel %vm606_vm15, %v2087_v39, %v603_v17  ;;  %v610_v21 = vsel %vm606_vm15, %v603_v17, %v2065_v7  ;;  %683 = vmatpush1.msra.mxu0 %v628_v19  ;;  %v625_v23 = vld [vmem:[#allocation3 + $0x68] sm:$0xff]  ;;  %v624_v25 = vld [vmem:[#allocation3 + $0x30] sm:$0xff] }
 0x15b   :  { %617 = vst [vmem:[#allocation3 + $0x70] sm:$0xf] %v609_v10  ;;  %618 = vst [vmem:[#allocation3 + $0x90] sm:$0xf] %v610_v21  ;;  %684 = vmatprep.subr.mxu0 %v625_v23  ;;  %v827_v17 = vld [vmem:[%s2471_s3] sm:$0xf]  ;;  %v1216_v10 = vrot.slane %v1211_v16, %v1839_v3  ;;  %v1220_v21 = vrot.slane %v1211_v16, %v1841_v4 }
 0x15c   :  { %685 = vmatpush1.msra.mxu0 %v624_v25  ;;  %v622_v34 = vld [vmem:[#allocation3 + $0x50] sm:$0xff] }
 0x15d   :  { %v466_v28 = vpop.permute.xlu1 %465  ;;  %686 = vmatprep.subr.mxu0 %v621_v24  ;;  %v1342_v19 = vld [vmem:[#allocation6 + $0x20] sm:$0xf]  ;;  %v831_v24 = vld [vmem:[%s2472_s4] sm:$0xf] }
 0x15e   :  { %v472_v30 = vsel %vm469_vm14, %v2069_v36, %v466_v28  ;;  %v473_v7 = vsel %vm469_vm14, %v466_v28, %v2067_v8  ;;  %v620_v31 = vld [vmem:[#allocation3] sm:$0xff]  ;;  %v1347_v28 = vrot.slane %v1342_v19, %v1839_v3 }
 0x15f   :  { %480 = vst [vmem:[#allocation3 + $0x98] sm:$0xf] %v472_v30  ;;  %481 = vst [vmem:[#allocation3 + $0x60] sm:$0xf] %v473_v7  ;;  %687 = vmatpush1.msra.mxu0 %v620_v31  ;;  %v1145_v30 = vld [vmem:[#allocation6 + $0x14] sm:$0xf] }
 0x160   :  { %1674 = vmatmul.mubr.msk.f32.vlgmr.msra.gmra.mxu0 %vm640_vm13, %v619_v29  ;;  %v1276_v31 = vld [vmem:[#allocation6 + $0x1c] sm:$0xf] }
 0x161   :  { %v300_v32 = vpop.permute.xlu1 %299  ;;  %1504 = vmatprep.mubr.f32.mxu0 %v1764_v1 }
 0x162   :  { %v305_v33 = vsel %vm301_vm3, %v2079_v22, %v300_v32  ;;  %v639_v35 = vld [vmem:[#allocation3 + $0x90] sm:$0xf]  ;;  %v1229_v32 = vcombine.low %v1216_v10, %v1220_v21 }
 0x163   :  { %v638_v37 = vld [vmem:[#allocation3 + $0x70] sm:$0xf]  ;;  %313 = vst [vmem:[#allocation3 + $0x80] sm:$0xf0] %v305_v33  ;;  %1675 = vmatprep.subr.msk.mxu1 %vm60_vm6, %v639_v35  ;;  %v1158_v33 = vrot.slane %v1145_v30, %v1843_v5  ;;  %v1162_v35 = vrot.slane %v1145_v30, %v1845_v6 }
 0x164   :  { %1676 = vmatpush1.msk.msra.mxu1 %vm60_vm6, %v638_v37  ;;  %v1049_v37 = vld [vmem:[#allocation6 + $0xc] sm:$0xf] }
 0x165   :  { %v163_v8 = vpop.permute.xlu1 %162 }
 0x166   :  { %v168_v36 = vsel %vm164_vm1, %v161_v48, %v163_v8  ;;  %v635_v38 = vld [vmem:[#allocation3 + $0x60] sm:$0xff]  ;;  %v634_v39 = vld [vmem:[#allocation3 + $0x98] sm:$0xff] }
 0x167   :  { %176 = vst [vmem:[#allocation3 + $0x18] sm:$0xf0] %v168_v36  ;;  %751 = vmatprep.subr.mxu1 %v635_v38  ;;  %v1281_v38 = vrot.slane %v1276_v31, %v1839_v3 }
 0x168   :  { %752 = vmatpush1.msra.mxu1 %v634_v39  ;;  %v1285_v39 = vrot.slane %v1276_v31, %v1841_v4 }
 0x169   :  { %753 = vmatprep.subr.mxu1 %v631_v40  ;;  %v1164_v40 = vcombine.low %v1158_v33, %v1162_v35 }
 0x16a   :  { %754 = vmatpush1.msra.mxu1 %v630_v41  ;;  %v627_v22 = vld [vmem:[#allocation3 + $0x80] sm:$0xff]  ;;  %v1054_v41 = vrot.slane %v1049_v37, %v1839_v3 }
 0x16b   :  { %755 = vmatprep.subr.mxu1 %v627_v22  ;;  %v1058_v22 = vrot.slane %v1049_v37, %v1841_v4 }
 0x16c   :  { %756 = vmatpush1.msra.mxu1 %v626_v2  ;;  %v984_v2 = vld [vmem:[#allocation6 + $0x8] sm:$0xf] }
 0x16e   :  { %v623_v26 = vld [vmem:[#allocation3 + $0x18] sm:$0xff] }
 0x16f   :  { %757 = vmatprep.subr.mxu1 %v623_v26  ;;  %v1294_v26 = vcombine.low %v1281_v38, %v1285_v39  ;;  %v881_v39 = vld [vmem:[#allocation6] sm:$0xf] }
 0x170   :  { %758 = vmatpush1.msra.mxu1 %v622_v34  ;;  %v1289_v34 = vrot.slane %v1276_v31, %v1843_v5  ;;  %v886_v60 = vrot.slane %v881_v39, %v1839_v3 }
 0x171   :  { %1677 = vmatmul.mubr.msk.f32.vlgmr.msra.gmra.mxu1 %vm640_vm13, %v619_v29  ;;  %v1351_v29 = vrot.slane %v1342_v19, %v1841_v4 }
 0x172   :  { %1575 = vmatprep.mubr.f32.mxu1 %v1764_v1 }
 0x173   :  { %v1360_v36 = vcombine.low %v1347_v28, %v1351_v29 }
 0x220   :  { %v2140_v15 = vpop.f32.mrf.mxu0 }
 0x221   :  { %v798_v18 = vsel %vm60_vm6, %v2140_v15, 0.0 }
 0x222   :  { %v2142_v42 = vpop.f32.mrf.mxu0 }
 0x223   :  { %v799_v20 = vsel %vm60_vm6, %v2142_v42, 0.0 }
 0x224   :  { %v800_v43 = vadd.f32 %v799_v20, %v798_v18  ;;  %v1293_v18 = vrot.slane %v1276_v31, %v1845_v6  ;;  %v1067_v20 = vcombine.low %v1054_v41, %v1058_v22  ;;  %v894_v22 = vrot.slane %v881_v39, %v1843_v5 }
 0x231   :  { %v2148_v44 = vpop.f32.mrf.mxu1 }
 0x232   :  { %v801_v45 = vsel %vm60_vm6, %v2148_v44, 0.0 }
 0x233   :  { %v2152_v27 = vpop.f32.mrf.mxu1  ;;  %v802_v46 = vadd.f32 %v801_v45, %v800_v43  ;;  %v989_v43 = vrot.slane %v984_v2, %v1839_v3  ;;  %v993_v45 = vrot.slane %v984_v2, %v1841_v4 }
 0x234   :  { %v803_v1 = vsel %vm60_vm6, %v2152_v27, 0.0 }
 0x235   :  { %v804_v47 = vadd.f32 %v803_v1, %v802_v46  ;;  %v1295_v46 = vcombine.low %v1289_v34, %v1293_v18  ;;  %v1355_v1 = vrot.slane %v1342_v19, %v1843_v5 }
 0x237   :  { %805 = vadd.xlane.f32.xlu0 %v804_v47  ;;  %v1359_v47 = vrot.slane %v1342_v19, %v1845_v6 }
 0x2c0   :  { %v806_v49 = vpop.xlane.xlu0 %805 }
 0x2c1   :  { %v808_v50 = vmul.f32 0.001953125, %v806_v49  ;;  %v918_v49 = vld [vmem:[#allocation6 + $0x4] sm:$0xf] }
 0x2c3   :  { %v809_v51 = vsub.f32 %v2140_v15, %v808_v50  ;;  %v810_v13 = vsub.f32 %v2142_v42, %v808_v50  ;;  %v811_v52 = vsub.f32 %v2148_v44, %v808_v50  ;;  %v812_v53 = vsub.f32 %v2152_v27, %v808_v50 }
 0x2c5   :  { %v813_v54 = vmul.f32 %v809_v51, %v809_v51  ;;  %v814_v55 = vmul.f32 %v810_v13, %v810_v13  ;;  %v815_v56 = vmul.f32 %v811_v52, %v811_v52  ;;  %v816_v57 = vmul.f32 %v812_v53, %v812_v53 }
 0x2c6   :  { %v931_v51 = vrot.slane %v918_v49, %v1843_v5  ;;  %v935_v13 = vrot.slane %v918_v49, %v1845_v6  ;;  %v1361_v52 = vcombine.low %v1355_v1, %v1359_v47  ;;  %v1150_v53 = vrot.slane %v1145_v30, %v1839_v3 }
 0x2c7   :  { %v817_v58 = vsel %vm60_vm6, %v813_v54, 0.0  ;;  %v818_v59 = vsel %vm60_vm6, %v814_v55, 0.0  ;;  %v820_v63 = vsel %vm60_vm6, %v815_v56, 0.0  ;;  %v822_v48 = vsel %vm60_vm6, %v816_v57, 0.0 }
 0x2c8   :  { %v819_v61 = vadd.f32 %v818_v59, %v817_v58  ;;  %v1154_v54 = vrot.slane %v1145_v30, %v1841_v4  ;;  %v937_v55 = vcombine.low %v931_v51, %v935_v13  ;;  %v1224_v57 = vrot.slane %v1211_v16, %v1843_v5 }
 0x2c9   :  { %v1228_v58 = vrot.slane %v1211_v16, %v1845_v6 }
 0x2ca   :  { %v821_v0 = vadd.f32 %v820_v63, %v819_v61  ;;  %v1163_v56 = vcombine.low %v1150_v53, %v1154_v54  ;;  %v1062_v61 = vrot.slane %v1049_v37, %v1843_v5  ;;  %v1066_v63 = vrot.slane %v1049_v37, %v1845_v6 }
 0x2cb   :  { %v1230_v59 = vcombine.low %v1224_v57, %v1228_v58 }
 0x2cc   :  { %v823_v9 = vadd.f32 %v822_v48, %v821_v0  ;;  %v1068_v0 = vcombine.low %v1062_v61, %v1066_v63  ;;  %v923_v48 = vrot.slane %v918_v49, %v1839_v3 }
 0x2ce   :  { %824 = vadd.xlane.f32.xlu1 %v823_v9  ;;  %v927_v9 = vrot.slane %v918_v49, %v1841_v4  ;;  %v890_v49 = vrot.slane %v881_v39, %v1841_v4 }
 0x2d0   :  { %v936_v11 = vcombine.low %v923_v48, %v927_v9 }
 0x357   :  { %v825_v12 = vpop.xlane.xlu1 %824 }
 0x358   :  { %v826_v14 = vmul.f32 0.001953125, %v825_v12 }
 0x35a   :  { %v828_v62 = vadd.f32 1e-05, %v826_v14 }
 0x35c   :  { %1711 = vrsqrt.f32 %v828_v62 }
 0x369   :  { %v1712_v23 = vpop.eup %1711 }
 0x36a   :  { %v830_v25 = vmul.f32 %v1712_v23, %v827_v17 }
 0x36c   :  { %836 = vperm.xlu0 %1706, %v830_v25   ;;  %v832_v7 = vmul.f32 %v830_v25, %v808_v50  ;;  %v1002_v50 = vcombine.low %v989_v43, %v993_v45 }
 0x36e   :  { %v833_v8 = vsub.f32 %v831_v24, %v832_v7 }
 0x370   :  { %845 = vperm.xlu1 %1707, %v833_v8   ;;  %1231 = vrot.lane.b32.xlu0 %v1229_v32, %s1768_s18 }
 0x374   :  { %1362 = vrot.lane.b32.xlu1 %v1360_v36, %s1766_s16  ;;  %1167 = vrot.lane.b32.xlu0 %v1164_v40, %s1769_s19 }
 0x378   :  { %1296 = vrot.lane.b32.xlu1 %v1294_v26, %s1767_s17  ;;  %1069 = vrot.lane.b32.xlu0 %v1067_v20, %s1770_s20 }
 0x37c   :  { %1298 = vrot.lane.b32.xlu1 %v1295_v46, %s1767_s17  ;;  %1004 = vrot.lane.b32.xlu0 %v1002_v50, %s1771_s21 }
 0x380   :  { %1364 = vrot.lane.b32.xlu1 %v1361_v52, %s1766_s16  ;;  %940 = vrot.lane.b32.xlu0 %v937_v55, %s1772_s22  ;;  %v899_v55 = vcombine.low %v886_v60, %v890_v49 }
 0x384   :  { %1165 = vrot.lane.b32.xlu1 %v1163_v56, %s1769_s19 }
 0x388   :  { %1233 = vrot.lane.b32.xlu1 %v1230_v59, %s1768_s18 }
 0x38c   :  { %1071 = vrot.lane.b32.xlu1 %v1068_v0, %s1770_s20 }
 0x390   :  { %938 = vrot.lane.b32.xlu1 %v936_v11, %s1772_s22 }
 0x3e7   :  { %v837_v12 = vpop.permute.xlu0 %836 }
 0x3e8   :  { %v839_v14 = vmul.f32 %v837_v12, %v2140_v15  ;;  %v840_v62 = vmul.f32 %v837_v12, %v2142_v42  ;;  %v841_v16 = vmul.f32 %v837_v12, %v2148_v44  ;;  %v842_v17 = vmul.f32 %v837_v12, %v2152_v27 }
 0x3e9   :  { %v997_v15 = vrot.slane %v984_v2, %v1843_v5  ;;  %v1001_v42 = vrot.slane %v984_v2, %v1845_v6  ;;  %v898_v2 = vrot.slane %v881_v39, %v1845_v6 }
 0x3eb   :  { %v846_v19 = vpop.permute.xlu1 %845  ;;  %v1003_v44 = vcombine.low %v997_v15, %v1001_v42  ;;  %v900_v18 = vcombine.low %v894_v22, %v898_v2  ;;  %v1232_v45 = vpop.permute.xlu0 %1231 }
 0x3ec   :  { %v848_v10 = vadd.f32 %v846_v19, %v839_v14  ;;  %v849_v21 = vadd.f32 %v846_v19, %v840_v62  ;;  %v850_v23 = vadd.f32 %v846_v19, %v841_v16  ;;  %v851_v25 = vadd.f32 %v846_v19, %v842_v17 }
 0x3ed   :  { %v1235_v4 = vrot.slane %v1232_v45, 4 }
 0x3ee   :  { %v852_v24 = vmax.f32 %v848_v10, 0.0  ;;  %v853_v28 = vmax.f32 %v849_v21, 0.0  ;;  %v854_v30 = vmax.f32 %v850_v23, 0.0  ;;  %v855_v7 = vmax.f32 %v851_v25, 0.0 }
 0x3ef   :  { %v2218_v27 = vpop.permute.xlu1 %1362  ;;  %v2252_v13 = vpop.permute.xlu0 %1167  ;;  %v1237_v59 = vsel %vm444_vm8, %v1235_v4, %v1232_v45 }
 0x3f0   :  { %v862_v29 = vcombine.low %v852_v24, %v853_v28  ;;  %v863_v31 = vcombine.low %v854_v30, %v855_v7  ;;  %v1366_v14 = vrot.slane %v2218_v27, 4  ;;  %v1170_v2 = vrot.slane %v2252_v13, 4 }
 0x3f2   :  { %864 = vrot.lane.b32.xlu1 %v862_v29, %s1765_s13  ;;  %v1368_v21 = vsel %vm581_vm7, %v1366_v14, %v2218_v27 }
 0x3f3   :  { %v2220_v32 = vpop.permute.xlu1 %1296  ;;  %v1070_v61 = vpop.permute.xlu0 %1069 }
 0x3f4   :  { %v1300_v51 = vrot.slane %v2220_v32, 4  ;;  %v1073_v28 = vrot.slane %v1070_v61, 4 }
 0x3f6   :  { %866 = vrot.lane.b32.xlu1 %v863_v31, %s1765_s13  ;;  %v1302_v3 = vsel %vm512_vm9, %v1300_v51, %v2220_v32  ;;  %v1075_v15 = vsel %vm275_vm11, %v1073_v28, %v1070_v61 }
 0x3f7   :  { %v2222_v33 = vpop.permute.xlu1 %1298  ;;  %v1005_v17 = vpop.permute.xlu0 %1004 }
 0x3f8   :  { %v1008_v19 = vrot.slane %v1005_v17, 4  ;;  %v1301_v27 = vrot.slane %v2222_v33, 4 }
 0x3fa   :  { %1006 = vrot.lane.b32.xlu1 %v1003_v44, %s1771_s21  ;;  %v1010_v39 = vsel %vm207_vm10, %v1008_v19, %v1005_v17  ;;  %v1303_v49 = vsel %vm60_vm6, %v1300_v51, %v1301_v27 }
 0x3fb   :  { %v2224_v35 = vpop.permute.xlu1 %1364 }
 0x3fc   :  { %v1367_v57 = vrot.slane %v2224_v35, 4 }
 0x3fe   :  { %v1369_v45 = vsel %vm60_vm6, %v1366_v14, %v1367_v57 }
 0x3ff   :  { %v2226_v37 = vpop.permute.xlu1 %1165  ;;  %v1370_v60 = vsel %vm581_vm7, %v1369_v45, %v2224_v35 }
 0x400   :  { %v1169_v16 = vrot.slane %v2226_v37, 4 }
 0x402   :  { %v1171_v24 = vsel %vm375_vm12, %v1169_v16, %v2226_v37  ;;  %v1172_v51 = vsel %vm60_vm6, %v1169_v16, %v1170_v2 }
 0x403   :  { %v2228_v8 = vpop.permute.xlu1 %1233 }
 0x404   :  { %v1236_v11 = vrot.slane %v2228_v8, 4 }
 0x406   :  { %v1238_v23 = vsel %vm60_vm6, %v1235_v4, %v1236_v11 }
 0x407   :  { %v2230_v36 = vpop.permute.xlu1 %1071  ;;  %v1239_v7 = vsel %vm444_vm8, %v1238_v23, %v2228_v8  ;;  %vm2487_vm8 = vcmask 777216  }
 0x40b   :  { %v2232_v38 = vpop.permute.xlu1 %938 }
 0x464   :  { %v865_v40 = vpop.permute.xlu1 %864 }
 0x465   :  { %v868_v41 = vrot.slane %v865_v40, 4 }
 0x467   :  { %v870_v26 = vsel %vm58_vm4, %v868_v41, %v865_v40 }
 0x468   :  { %876 = vst.msk [vmem:[#allocation4] sm:$0xff] %vm1897_vm5, %v870_v26  ;;  %v867_v34 = vpop.permute.xlu1 %866  ;;  %vm2485_vm5 = vcmask 908288  }
 0x469   :  { %v869_v20 = vrot.slane %v867_v34, 4  ;;  %vm2486_vm7 = vmmov %vm2485_vm5 }
 0x46b   :  { %v871_v43 = vsel %vm60_vm6, %v868_v41, %v869_v20  ;;  %878 = vst.msk [vmem:[#allocation4 + $0x10] sm:$0xf] %vm46_vm0, %v869_v20  ;;  %v942_v41 = vrot.slane %v2232_v38, 4  ;;  %vm2483_vm0 = vcmask 7168  }
 0x46c   :  { %v2242_v46 = vsel %vm58_vm4, %v871_v43, %v867_v34  ;;  %v1007_v1 = vpop.permute.xlu1 %1006  ;;  %v1074_v34 = vrot.slane %v2230_v36, 4  ;;  %vm2484_vm4 = vmmov %vm2483_vm0 }
 0x46d   :  { %v904_v5 = vmul.f32 %v900_v18, %v2242_v46  ;;  %v1009_v50 = vrot.slane %v1007_v1, 4  ;;  %v2297_v42 = vmul.f32 %v1239_v7, %v2242_v46  ;;  %v944_v43 = vsel %vm2483_vm0, %v942_v41, %v2232_v38 }
 0x46e   :  { %v1375_v38 = vmul.f32 %v1370_v60, %v2242_v46 }
 0x46f   :  { %v2245_v6 = vld [vmem:[#allocation4] sm:$0xff]  ;;  %913 = vst [vmem:[#allocation5 + $0x68] sm:$0xf] %v904_v5  ;;  %v908_v47 = vcombine.high %v904_v5, %v904_v5  ;;  %v1011_v29 = vsel %vm60_vm6, %v1008_v19, %v1009_v50  ;;  %v1250_v14 = vcombine.high %v2297_v42, %v2297_v42 }
 0x470   :  { %1120 = vrot.lane.b32.xlu1 %v2245_v6, %s1773_s23  ;;  %v2264_v58 = vmul.f32 %v1302_v3, %v2245_v6  ;;  %v903_v63 = vmul.f32 %v899_v55, %v2245_v6  ;;  %v2273_v12 = vmul.f32 %v1237_v59, %v2245_v6  ;;  %v1118_v10 = vcombine.high %v2245_v6, %v2245_v6 }
 0x471   :  { %914 = vst [vmem:[#allocation5 + $0x18] sm:$0xf] %v908_v47  ;;  %v1374_v25 = vmul.f32 %v1368_v21, %v2245_v6  ;;  %v1177_v30 = vmul.f32 %v1171_v24, %v2245_v6  ;;  %v1012_v31 = vsel %vm207_vm10, %v1011_v29, %v1007_v1  ;;  %v1081_v37 = vmul.f32 %v1075_v15, %v2245_v6  ;;  %vm2489_vm10 = vmmov %vm2485_vm5 }
 0x472   :  { %v983_v52 = vld [vmem:[#allocation4 + $0x10] sm:$0xf]  ;;  %v907_v9 = vcombine.high %v903_v63, %v903_v63  ;;  %911 = vst [vmem:[#allocation5 + $0x28] sm:$0xf] %v903_v63  ;;  %v2306_v8 = vmul.f32 %v1012_v31, %v2242_v46  ;;  %v1016_v26 = vmul.f32 %v1010_v39, %v2245_v6  ;;  %v950_v5 = vmul.f32 %v944_v43, %v2245_v6 }
 0x473   :  { %v1114_v53 = vld [vmem:[#allocation4 + $0x10] sm:$0xf]  ;;  %v1018_v54 = vmul.f32 %v1009_v50, %v983_v52  ;;  %v1076_v1 = vsel %vm60_vm6, %v1073_v28, %v1074_v34  ;;  %v1304_v52 = vsel %vm512_vm9, %v1303_v49, %v2222_v33  ;;  %v1380_v35 = vcombine.high %v1374_v25, %v1374_v25  ;;  %vm2488_vm9 = vmmov %vm2485_vm5 }
 0x474   :  { %1128 = vrot.lane.b32.xlu0 %v1114_v53, %s1773_s23  ;;  %v1341_v56 = vld [vmem:[#allocation4 + $0x10] sm:$0xf]  ;;  %912 = vst [vmem:[#allocation5 + $0x38] sm:$0xf] %v907_v9  ;;  %v1077_v50 = vsel %vm275_vm11, %v1076_v1, %v2230_v36  ;;  %v1309_v32 = vmul.f32 %v1304_v52, %v2242_v46  ;;  %v1119_v53 = vcombine.high %v2242_v46, %v2242_v46  ;;  %vm2490_vm11 = vmmov %vm2487_vm8 }
 0x475   :  { %1032 = vrot.lane.b32.xlu1 %v1018_v54, %s1776_s26  ;;  %v1376_v0 = vmul.f32 %v1367_v57, %v1341_v56  ;;  %v1210_v48 = vld [vmem:[#allocation4 + $0x10] sm:$0xf]  ;;  %v1082_v6 = vmul.f32 %v1077_v50, %v2242_v46  ;;  %v1314_v36 = vcombine.low %v2264_v58, %v2264_v58  ;;  %v1173_v33 = vsel %vm375_vm12, %v1172_v51, %v2252_v13  ;;  %v941_v56 = vpop.permute.xlu0 %940 }
 0x476   :  { %v1245_v62 = vmul.f32 %v1236_v11, %v1210_v48  ;;  %v1275_v44 = vld [vmem:[#allocation4 + $0x10] sm:$0xf]  ;;  %v1178_v54 = vmul.f32 %v1173_v33, %v2242_v46  ;;  %v1183_v55 = vcombine.low %v1177_v30, %v1177_v30  ;;  %v1249_v3 = vcombine.high %v2273_v12, %v2273_v12 }
 0x477   :  { %v1310_v40 = vmul.f32 %v1301_v27, %v1275_v44  ;;  %v1144_v22 = vld [vmem:[#allocation4 + $0x10] sm:$0xf]  ;;  %v1087_v4 = vcombine.low %v1081_v37, %v1081_v37  ;;  %v1022_v57 = vcombine.high %v1016_v26, %v1016_v26  ;;  %v943_v13 = vrot.slane %v941_v56, 4 }
 0x478   :  { %1124 = vrot.lane.b32.xlu0 %v2242_v46, %s1773_s23  ;;  %v1179_v20 = vmul.f32 %v1170_v2, %v1144_v22  ;;  %v956_v59 = vcombine.low %v950_v5, %v950_v5  ;;  %v1184_v63 = vcombine.low %v1178_v54, %v1178_v54  ;;  %v1048_v9 = vld [vmem:[#allocation4 + $0x10] sm:$0xf]  ;;  %v1088_v11 = vcombine.low %v1082_v6, %v1082_v6 }
 0x479   :  { %1319 = vrot.lane.b32.xlu1 %v2264_v58, %s1777_s27  ;;  %v1316_v18 = vcombine.low %v1310_v40, %v1310_v40  ;;  %v1315_v58 = vcombine.low %v1309_v32, %v1309_v32  ;;  %v945_v61 = vsel %vm60_vm6, %v942_v41, %v943_v13  ;;  %v917_v16 = vld [vmem:[#allocation4 + $0x10] sm:$0xf]  ;;  %v1023_v21 = vcombine.high %v2306_v8, %v2306_v8 }
 0x47a   :  { %v1185_v47 = vcombine.low %v1179_v20, %v1179_v20  ;;  %v946_v48 = vsel %vm2484_vm4, %v945_v61, %v941_v56  ;;  %vm2491_vm12 = vcmask 1031168   ;;  %vm2493_vm4 = vmmov %vm2487_vm8 }
 0x47b   :  { %vm2492_vm0 = vmmov %vm2491_vm12 }
 0x47c   :  { %1390 = vrot.lane.b32.xlu0 %v1376_v0, %s1774_s24  ;;  %v1381_v0 = vcombine.high %v1375_v38, %v1375_v38 }
 0x47d   :  { %1251 = vrot.lane.b32.xlu1 %v2273_v12, %s1775_s25  ;;  %v951_v12 = vmul.f32 %v946_v48, %v2242_v46 }
 0x47f   :  { %v957_v17 = vcombine.low %v951_v12, %v951_v12 }
 0x480   :  { %1259 = vrot.lane.b32.xlu0 %v1245_v62, %s1775_s25  ;;  %v1083_v62 = vmul.f32 %v1074_v34, %v1048_v9 }
 0x481   :  { %1122 = vrot.lane.b32.xlu1 %v1118_v10, %s1773_s23  ;;  %v952_v10 = vmul.f32 %v943_v13, %v917_v16 }
 0x482   :  { %v1089_v19 = vcombine.low %v1083_v62, %v1083_v62 }
 0x483   :  { %v958_v46 = vcombine.low %v952_v10, %v952_v10 }
 0x484   :  { %1382 = vrot.lane.b32.xlu0 %v1374_v25, %s1774_s24 }
 0x485   :  { %1188 = vrot.lane.b32.xlu1 %v1177_v30, %s1778_s28 }
 0x488   :  { %1255 = vrot.lane.b32.xlu0 %v2297_v42, %s1775_s25 }
 0x489   :  { %1092 = vrot.lane.b32.xlu1 %v1081_v37, %s1779_s29 }
 0x48c   :  { %1028 = vrot.lane.b32.xlu0 %v2306_v8, %s1776_s26 }
 0x48d   :  { %1024 = vrot.lane.b32.xlu1 %v1016_v26, %s1776_s26 }
 0x490   :  { %1325 = vrot.lane.b32.xlu0 %v1316_v18, %s1777_s27 }
 0x491   :  { %961 = vrot.lane.b32.xlu1 %v950_v5, %s1780_s30 }
 0x494   :  { %1194 = vrot.lane.b32.xlu0 %v1185_v47, %s1778_s28 }
 0x495   :  { %1386 = vrot.lane.b32.xlu1 %v1375_v38, %s1774_s24 }
 0x498   :  { %1096 = vrot.lane.b32.xlu0 %v1082_v6, %s1779_s29 }
 0x499   :  { %1323 = vrot.lane.b32.xlu1 %v1309_v32, %s1777_s27 }
 0x49c   :  { %1384 = vrot.lane.b32.xlu0 %v1380_v35, %s1774_s24 }
 0x49d   :  { %1126 = vrot.lane.b32.xlu1 %v1119_v53, %s1773_s23 }
 0x4a0   :  { %1317 = vrot.lane.b32.xlu0 %v1314_v36, %s1777_s27 }
 0x4a1   :  { %1192 = vrot.lane.b32.xlu1 %v1178_v54, %s1778_s28 }
 0x4a4   :  { %1186 = vrot.lane.b32.xlu0 %v1183_v55, %s1778_s28 }
 0x4a5   :  { %1253 = vrot.lane.b32.xlu1 %v1249_v3, %s1775_s25 }
 0x4a8   :  { %1090 = vrot.lane.b32.xlu0 %v1087_v4, %s1779_s29 }
 0x4a9   :  { %1026 = vrot.lane.b32.xlu1 %v1022_v57, %s1776_s26 }
 0x4ac   :  { %1321 = vrot.lane.b32.xlu0 %v1315_v58, %s1777_s27 }
 0x4ad   :  { %959 = vrot.lane.b32.xlu1 %v956_v59, %s1780_s30 }
 0x4b0   :  { %1190 = vrot.lane.b32.xlu0 %v1184_v63, %s1778_s28 }
 0x4b1   :  { %1388 = vrot.lane.b32.xlu1 %v1381_v0, %s1774_s24 }
 0x4b4   :  { %1094 = vrot.lane.b32.xlu0 %v1088_v11, %s1779_s29 }
 0x4b5   :  { %1257 = vrot.lane.b32.xlu1 %v1250_v14, %s1775_s25 }
 0x4b8   :  { %963 = vrot.lane.b32.xlu0 %v957_v17, %s1780_s30 }
 0x4b9   :  { %1098 = vrot.lane.b32.xlu1 %v1089_v19, %s1779_s29 }
 0x4bc   :  { %1030 = vrot.lane.b32.xlu0 %v1023_v21, %s1776_s26 }
 0x4bd   :  { %967 = vrot.lane.b32.xlu1 %v958_v46, %s1780_s30 }
 0x4c0   :  { %965 = vrot.lane.b32.xlu0 %v951_v12, %s1780_s30 }
 0x4e2   :  { %v1121_v23 = vpop.permute.xlu1 %1120 }
 0x4e6   :  { %v1129_v25 = vpop.permute.xlu0 %1128 }
 0x4e7   :  { %v2375_v24 = vpop.permute.xlu1 %1032 }
 0x4ea   :  { %v1125_v28 = vpop.permute.xlu0 %1124 }
 0x4eb   :  { %v1320_v29 = vpop.permute.xlu1 %1319 }
 0x4ee   :  { %v2377_v30 = vpop.permute.xlu0 %1390 }
 0x4ef   :  { %v1252_v7 = vpop.permute.xlu1 %1251 }
 0x4f2   :  { %v2379_v15 = vpop.permute.xlu0 %1259 }
 0x4f3   :  { %v1123_v42 = vpop.permute.xlu1 %1122 }
 0x4f4   :  { %v1130_v31 = vsel %vm2485_vm5, %v1121_v23, %v1123_v42  ;;  %v1131_v44 = vsel %vm2486_vm7, %v1123_v42, %v1125_v28  ;;  %vm2494_vm5 = vmmov %vm2493_vm4 }
 0x4f5   :  { %1138 = vst [vmem:[#allocation5 + $0x88] sm:$0xf] %v1130_v31  ;;  %1139 = vst [vmem:[#allocation5 + $0x90] sm:$0xf] %v1131_v44 }
 0x4f6   :  { %v1383_v27 = vpop.permute.xlu0 %1382 }
 0x4f7   :  { %v1189_v37 = vpop.permute.xlu1 %1188 }
 0x4fa   :  { %v2383_v39 = vpop.permute.xlu0 %1255 }
 0x4fb   :  { %v2385_v8 = vpop.permute.xlu1 %1092 }
 0x4fe   :  { %v2387_v40 = vpop.permute.xlu0 %1028 }
 0x4ff   :  { %v1025_v41 = vpop.permute.xlu1 %1024 }
 0x502   :  { %v1326_v22 = vpop.permute.xlu0 %1325 }
 0x503   :  { %v2389_v2 = vpop.permute.xlu1 %961 }
 0x506   :  { %v1195_v26 = vpop.permute.xlu0 %1194 }
 0x507   :  { %v1387_v34 = vpop.permute.xlu1 %1386 }
 0x50a   :  { %v2391_v18 = vpop.permute.xlu0 %1096 }
 0x50b   :  { %v1324_v20 = vpop.permute.xlu1 %1323 }
 0x50c   :  { %v1330_v43 = vsel %vm2487_vm8, %v1324_v20, %v1326_v22 }
 0x50d   :  { %1338 = vst [vmem:[#allocation5 + $0x10] sm:$0xf0] %v1330_v43 }
 0x50e   :  { %v1385_v45 = vpop.permute.xlu0 %1384 }
 0x50f   :  { %v1392_v5 = vsel %vm606_vm15, %v1383_v27, %v1385_v45  ;;  %v1393_v1 = vsel %vm606_vm15, %v1385_v45, %v1387_v34  ;;  %v1127_v47 = vpop.permute.xlu1 %1126 }
 0x510   :  { %1400 = vst [vmem:[#allocation5 + $0x60] sm:$0xf] %v1392_v5  ;;  %1401 = vst [vmem:[#allocation5 + $0x58] sm:$0xf] %v1393_v1  ;;  %v1132_v60 = vsel %vm2488_vm9, %v1125_v28, %v1127_v47  ;;  %v1133_v49 = vsel %vm2489_vm10, %v1127_v47, %v1129_v25 }
 0x511   :  { %1140 = vst [vmem:[#allocation5 + $0x40] sm:$0xf] %v1132_v60  ;;  %1141 = vst [vmem:[#allocation5 + $0x8] sm:$0xf] %v1133_v49 }
 0x512   :  { %v1318_v38 = vpop.permute.xlu0 %1317 }
 0x513   :  { %v1327_v50 = vsel %vm2490_vm11, %v1318_v38, %v1320_v29  ;;  %v1193_v6 = vpop.permute.xlu1 %1192 }
 0x514   :  { %1335 = vst [vmem:[#allocation5 + $0x80] sm:$0xf0] %v1327_v50  ;;  %v1199_v52 = vsel %vm401_vm2, %v1193_v6, %v1195_v26 }
 0x515   :  { %1207 = vst [vmem:[#allocation5 + $0x8] sm:$0xf0] %v1199_v52 }
 0x516   :  { %v1187_v32 = vpop.permute.xlu0 %1186 }
 0x517   :  { %v1196_v35 = vsel %vm401_vm2, %v1187_v32, %v1189_v37  ;;  %v1422_v51 = vld [vmem:[#allocation5 + $0x58] sm:$0xf]  ;;  %v1421_v53 = vld [vmem:[#allocation5 + $0x60] sm:$0xf]  ;;  %v1254_v36 = vpop.permute.xlu1 %1253 }
 0x518   :  { %1204 = vst [vmem:[#allocation5 + $0x88] sm:$0xf0] %v1196_v35  ;;  %1678 = vmatprep.subr.msk.mxu0 %vm60_vm6, %v1422_v51  ;;  %v1261_v33 = vsel %vm469_vm14, %v1252_v7, %v1254_v36  ;;  %v1262_v54 = vsel %vm469_vm14, %v1254_v36, %v2383_v39 }
 0x519   :  { %1679 = vmatpush1.msk.msra.mxu0 %vm60_vm6, %v1421_v53  ;;  %1269 = vst [vmem:[#allocation5 + $0x80] sm:$0xf] %v1261_v33  ;;  %1270 = vst [vmem:[#allocation5 + $0x78] sm:$0xf] %v1262_v54 }
 0x51a   :  { %v1091_v55 = vpop.permute.xlu0 %1090 }
 0x51b   :  { %v1100_v3 = vsel %vm301_vm3, %v1091_v55, %v2385_v8  ;;  %v1027_v4 = vpop.permute.xlu1 %1026 }
 0x51c   :  { %1108 = vst [vmem:[#allocation5 + $0x70] sm:$0xf0] %v1100_v3  ;;  %v1034_v56 = vsel %vm2491_vm12, %v1025_v41, %v1027_v4  ;;  %v1035_v57 = vsel %vm2492_vm0, %v1027_v4, %v2387_v40 }
 0x51d   :  { %1042 = vst [vmem:[#allocation5 + $0x70] sm:$0xf] %v1034_v56  ;;  %1043 = vst [vmem:[#allocation5 + $0x30] sm:$0xf] %v1035_v57 }
 0x51e   :  { %v1322_v13 = vpop.permute.xlu0 %1321 }
 0x51f   :  { %v1328_v58 = vsel %vm2493_vm4, %v1320_v29, %v1322_v13  ;;  %v1329_v59 = vsel %vm2494_vm5, %v1322_v13, %v1324_v20  ;;  %v960_v61 = vpop.permute.xlu1 %959  ;;  %v1413_v7 = vld [vmem:[#allocation5 + $0x88] sm:$0xff]  ;;  %v1404_v20 = vld [vmem:[%s2473_s5] sm:$0xf] }
 0x520   :  { %1336 = vst [vmem:[#allocation5 + $0x78] sm:$0xf0] %v1328_v58  ;;  %1337 = vst [vmem:[#allocation5 + $0x50] sm:$0xf0] %v1329_v59  ;;  %v969_v63 = vsel %vm164_vm1, %v960_v61, %v2389_v2  ;;  %v1417_v21 = vld [vmem:[#allocation5 + $0x80] sm:$0xff] }
 0x521   :  { %977 = vst [vmem:[#allocation5 + $0x28] sm:$0xf0] %v969_v63 }
 0x522   :  { %v1191_v0 = vpop.permute.xlu0 %1190 }
 0x523   :  { %v1197_v48 = vsel %vm401_vm2, %v1189_v37, %v1191_v0  ;;  %v1198_v9 = vsel %vm401_vm2, %v1191_v0, %v1193_v6  ;;  %v1389_v11 = vpop.permute.xlu1 %1388 }
 0x524   :  { %1205 = vst [vmem:[#allocation5 + $0x90] sm:$0xf0] %v1197_v48  ;;  %1206 = vst [vmem:[#allocation5 + $0x40] sm:$0xf0] %v1198_v9  ;;  %v1394_v12 = vsel %vm606_vm15, %v1387_v34, %v1389_v11  ;;  %v1395_v14 = vsel %vm606_vm15, %v1389_v11, %v2377_v30 }
 0x525   :  { %1402 = vst [vmem:[#allocation5 + $0x98] sm:$0xf] %v1394_v12  ;;  %1403 = vst [vmem:[#allocation5 + $0x48] sm:$0xf] %v1395_v14 }
 0x526   :  { %v1095_v62 = vpop.permute.xlu0 %1094  ;;  %vm2496_vm15 = vmmov %vm2492_vm0 }
 0x527   :  { %v1101_v16 = vsel %vm301_vm3, %v2385_v8, %v1095_v62  ;;  %v1102_v17 = vsel %vm301_vm3, %v1095_v62, %v2391_v18  ;;  %v1418_v19 = vld [vmem:[#allocation5 + $0x78] sm:$0xff]  ;;  %v1258_v10 = vpop.permute.xlu1 %1257  ;;  %v1409_v8 = vld [vmem:[#allocation5 + $0x70] sm:$0xff] }
 0x528   :  { %1109 = vst [vmem:[#allocation5 + $0x30] sm:$0xf0] %v1101_v16  ;;  %1110 = vst [vmem:[#allocation5] sm:$0xf0] %v1102_v17  ;;  %1464 = vmatprep.subr.mxu0 %v1418_v19  ;;  %v1263_v46 = vsel %vm469_vm14, %v2383_v39, %v1258_v10  ;;  %v1264_v23 = vsel %vm469_vm14, %v1258_v10, %v2379_v15  ;;  %v1405_v43 = vld [vmem:[#allocation5 + $0x28] sm:$0xff] }
 0x529   :  { %1465 = vmatpush1.msra.mxu0 %v1417_v21  ;;  %1271 = vst [vmem:[#allocation5 + $0x50] sm:$0xf] %v1263_v46  ;;  %1272 = vst [vmem:[#allocation5 + $0x10] sm:$0xf] %v1264_v23  ;;  %v1610_v19 = vld [vmem:[%s2474_s6] sm:$0xf] }
 0x52a   :  { %v964_v25 = vpop.permute.xlu0 %963  ;;  %vm2495_vm14 = vmmov %vm2492_vm0  ;;  %v1614_v46 = vld [vmem:[%s2475_s7] sm:$0xf]  ;;  %s1782_s6 = smov [#allocation9]  }
 0x52b   :  { %v970_v28 = vsel %vm164_vm1, %v2389_v2, %v964_v25  ;;  %v1414_v29 = vld [vmem:[#allocation5 + $0x90] sm:$0xff]  ;;  %v1099_v30 = vpop.permute.xlu1 %1098  ;;  %v1415_v45 = vld [vmem:[#allocation5 + $0x40] sm:$0xff]  ;;  %s1663_s7 = sshll.u32 %s1782_s6, 4  ;;  %s1664_s7 = int_to_ptr.vmem [resolvable:$true] %s1663_s7 }
 0x52c   :  { %978 = vst [vmem:[#allocation5 + $0x38] sm:$0xf0] %v970_v28  ;;  %1466 = vmatprep.subr.mxu0 %v1414_v29  ;;  %v1103_v42 = vsel %vm301_vm3, %v2391_v18, %v1099_v30  ;;  %v1424_v31 = vld [vmem:[#allocation5 + $0x48] sm:$0xf]  ;;  %v1423_v44 = vld [vmem:[#allocation5 + $0x98] sm:$0xf]  ;;  %p1742_p6 = scmp.lt.s32.totalorder %s1664_s7, %s1664_s7 }
 0x52d   :  { %1467 = vmatpush1.msra.mxu0 %v1413_v7  ;;  %1111 = vst [vmem:[#allocation5 + $0x20] sm:$0xf0] %v1103_v42  ;;  %1681 = vmatprep.subr.msk.mxu1 %vm60_vm6, %v1424_v31  ;;  %v1715_v29 = vld [vmem:[%s2468_s0] sm:$0xff]  ;;  %v1716_v7 = vld [vmem:[%s2468_s0 + $0x8] sm:$0xff]  ;;  %s1737_s0 = scalar_lea.vmem %s1664_s7, 256 }
 0x52e   :  { %v1031_v15 = vpop.permute.xlu0 %1030  ;;  %1682 = vmatpush1.msk.msra.mxu1 %vm60_vm6, %v1423_v44  ;;  %v1635_v30 = vcombine.high %v1715_v29, %v1715_v29  ;;  %v1636_v42 = vcombine.high %v1716_v7, %v1716_v7  ;;  %p1738_p5 = scmp.ne.s32.totalorder %s1664_s7, %s1737_s0  ;;  %p1743_p7 = scmp.lt.s32.totalorder %s1737_s0, %s1737_s0 }
 0x52f   :  { %v1036_v27 = vsel %vm2495_vm14, %v2387_v40, %v1031_v15  ;;  %v1037_v37 = vsel %vm2496_vm15, %v1031_v15, %v2375_v24  ;;  %v1410_v39 = vld [vmem:[#allocation5 + $0x30] sm:$0xff]  ;;  %v968_v2 = vpop.permute.xlu1 %967  ;;  %v1416_v24 = vld [vmem:[#allocation5 + $0x8] sm:$0xff] }
 0x530   :  { %1044 = vst [vmem:[#allocation5] sm:$0xf] %v1036_v27  ;;  %1045 = vst [vmem:[#allocation5 + $0x20] sm:$0xf] %v1037_v37  ;;  %1468 = vmatprep.subr.mxu0 %v1410_v39  ;;  %v1420_v41 = vld [vmem:[#allocation5 + $0x10] sm:$0xff]  ;;  %p1744_p8 = por %p1743_p7, %p1742_p6 }
 0x531   :  { %1469 = vmatpush1.msra.mxu0 %v1409_v8  ;;  %v1419_v22 = vld [vmem:[#allocation5 + $0x50] sm:$0xff]  ;;  %1535 = vmatprep.subr.mxu1 %v1420_v41 }
 0x532   :  { %v966_v26 = vpop.permute.xlu0 %965  ;;  %1536 = vmatpush1.msra.mxu1 %v1419_v22  ;;  %p1745_p9 = pnand %p1744_p8, %p1738_p5 }
 0x533   :  { %v971_v34 = vsel %vm164_vm1, %v964_v25, %v966_v26  ;;  %v972_v40 = vsel %vm164_vm1, %v966_v26, %v968_v2  ;;  %v1406_v18 = vld [vmem:[#allocation5 + $0x38] sm:$0xff]  ;;  %1537 = vmatprep.subr.mxu1 %v1416_v24 }
 0x534   :  { %979 = vst [vmem:[#allocation5 + $0x68] sm:$0xf0] %v971_v34  ;;  %980 = vst [vmem:[#allocation5 + $0x18] sm:$0xf0] %v972_v40  ;;  %1470 = vmatprep.subr.mxu0 %v1406_v18  ;;  %1538 = vmatpush1.msra.mxu1 %v1415_v45 }
 0x535   :  { %1471 = vmatpush1.msra.mxu0 %v1405_v43 }
 0x536   :  { %1680 = vmatmul.mubr.msk.f32.vlgmr.msra.gmra.mxu0 %vm640_vm13, %v1404_v20 }
 0x537   :  { %v1412_v5 = vld [vmem:[#allocation5 + $0x20] sm:$0xff] }
 0x538   :  { %v1411_v1 = vld [vmem:[#allocation5] sm:$0xff]  ;;  %1539 = vmatprep.subr.mxu1 %v1412_v5 }
 0x539   :  { %1540 = vmatpush1.msra.mxu1 %v1411_v1 }
 0x53b   :  { %v1408_v47 = vld [vmem:[#allocation5 + $0x18] sm:$0xff]  ;;  %v1407_v60 = vld [vmem:[#allocation5 + $0x68] sm:$0xff] }
 0x53c   :  { %1541 = vmatprep.subr.mxu1 %v1408_v47 }
 0x53d   :  { %1542 = vmatpush1.msra.mxu1 %v1407_v60 }
 0x53e   :  { %1683 = vmatmul.mubr.msk.f32.vlgmr.msra.gmra.mxu1 %vm640_vm13, %v1404_v20 }
 0x5f6   :  { %v1506_v49 = vpop.f32.mrf.mxu0 }
 0x5f7   :  { %v1582_v50 = vsel %vm60_vm6, %v1506_v49, 0.0 }
 0x5f8   :  { %v1508_v38 = vpop.f32.mrf.mxu0 }
 0x5f9   :  { %v1583_v6 = vsel %vm60_vm6, %v1508_v38, 0.0 }
 0x5fa   :  { %v1584_v52 = vadd.f32 %v1583_v6, %v1582_v50 }
 0x5fe   :  { %v1577_v32 = vpop.f32.mrf.mxu1 }
 0x5ff   :  { %v1585_v35 = vsel %vm60_vm6, %v1577_v32, 0.0 }
 0x600   :  { %v1586_v51 = vadd.f32 %v1585_v35, %v1584_v52  ;;  %v1579_v53 = vpop.f32.mrf.mxu1 }
 0x601   :  { %v1587_v36 = vsel %vm60_vm6, %v1579_v53, 0.0 }
 0x602   :  { %v1588_v33 = vadd.f32 %v1587_v36, %v1586_v51 }
 0x604   :  { %1589 = vadd.xlane.f32.xlu0 %v1588_v33 }
 0x68d   :  { %v1590_v54 = vpop.xlane.xlu0 %1589 }
 0x68e   :  { %v1591_v55 = vmul.f32 0.001953125, %v1590_v54 }
 0x690   :  { %v1592_v3 = vsub.f32 %v1506_v49, %v1591_v55  ;;  %v1593_v4 = vsub.f32 %v1508_v38, %v1591_v55  ;;  %v1594_v56 = vsub.f32 %v1577_v32, %v1591_v55  ;;  %v1595_v57 = vsub.f32 %v1579_v53, %v1591_v55 }
 0x692   :  { %v1596_v13 = vmul.f32 %v1592_v3, %v1592_v3  ;;  %v1597_v58 = vmul.f32 %v1593_v4, %v1593_v4  ;;  %v1598_v59 = vmul.f32 %v1594_v56, %v1594_v56  ;;  %v1599_v61 = vmul.f32 %v1595_v57, %v1595_v57 }
 0x694   :  { %v1600_v63 = vsel %vm60_vm6, %v1596_v13, 0.0  ;;  %v1601_v0 = vsel %vm60_vm6, %v1597_v58, 0.0  ;;  %v1603_v9 = vsel %vm60_vm6, %v1598_v59, 0.0  ;;  %v1605_v12 = vsel %vm60_vm6, %v1599_v61, 0.0 }
 0x695   :  { %v1602_v48 = vadd.f32 %v1601_v0, %v1600_v63 }
 0x697   :  { %v1604_v11 = vadd.f32 %v1603_v9, %v1602_v48 }
 0x699   :  { %v1606_v14 = vadd.f32 %v1605_v12, %v1604_v11 }
 0x69b   :  { %1607 = vadd.xlane.f32.xlu1 %v1606_v14 }
 0x724   :  { %v1608_v62 = vpop.xlane.xlu1 %1607 }
 0x725   :  { %v1609_v16 = vmul.f32 0.001953125, %v1608_v62 }
 0x727   :  { %v1611_v17 = vadd.f32 1e-05, %v1609_v16 }
 0x729   :  { %1713 = vrsqrt.f32 %v1611_v17 }
 0x736   :  { %v1714_v10 = vpop.eup %1713 }
 0x737   :  { %v1613_v21 = vmul.f32 %v1714_v10, %v1610_v19 }
 0x739   :  { %1619 = vperm.xlu0 %1706, %v1613_v21   ;;  %v1615_v23 = vmul.f32 %v1613_v21, %v1591_v55 }
 0x73b   :  { %v1616_v25 = vsub.f32 %v1614_v46, %v1615_v23 }
 0x73d   :  { %1628 = vperm.xlu1 %1707, %v1616_v25  }
 0x7b4   :  { %v1620_v28 = vpop.permute.xlu0 %1619 }
 0x7b5   :  { %v1622_v31 = vmul.f32 %v1620_v28, %v1506_v49  ;;  %v1623_v44 = vmul.f32 %v1620_v28, %v1508_v38  ;;  %v1624_v15 = vmul.f32 %v1620_v28, %v1577_v32  ;;  %v1625_v27 = vmul.f32 %v1620_v28, %v1579_v53 }
 0x7b8   :  { %v1629_v37 = vpop.permute.xlu1 %1628 }
 0x7b9   :  { %v1631_v39 = vadd.f32 %v1629_v37, %v1622_v31  ;;  %v1632_v8 = vadd.f32 %v1629_v37, %v1623_v44  ;;  %v1633_v41 = vadd.f32 %v1629_v37, %v1624_v15  ;;  %v1634_v22 = vadd.f32 %v1629_v37, %v1625_v27 }
 0x7bb   :  { %v1639_v2 = vadd.f32 %v1715_v29, %v1631_v39  ;;  %v1640_v26 = vadd.f32 %v1635_v30, %v1632_v8  ;;  %v1641_v34 = vadd.f32 %v1716_v7, %v1633_v41  ;;  %v1642_v40 = vadd.f32 %v1636_v42, %v1634_v22 }
 0x7bd   :  { %v1643_v18 = vmax.f32 %v1639_v2, 0.0  ;;  %v1644_v24 = vmax.f32 %v1640_v26, 0.0  ;;  %v1645_v20 = vmax.f32 %v1641_v34, 0.0  ;;  %v1646_v43 = vmax.f32 %v1642_v40, 0.0 }
 0x7bf   :  { %v1651_v45 = vcombine.low %v1643_v18, %v1644_v24  ;;  %v1652_v5 = vcombine.low %v1645_v20, %v1646_v43 }
 0x7c1   :  { %1655 = vst [vmem:[#allocation9] sm:$0xff] %v1651_v45  ;;  %1656 = vst [vmem:[#allocation9 + $0x8] sm:$0xff] %v1652_v5 }
 0x7c2   :  { %1748 = shalt.err (!%p1745_p9)
}
 0x7c3   :  { %1666 = dma.vmem_to_hbm [thread:$0]  %s1664_s7, 256, %s2476_s8, [#allocation8]  }
 0x7c4   :  { %1759 = dma.done.wait [#allocation8], 256  }
 0x7c5   :  { %1760 = vsyncadd [#allocation8], 4294967040 }
 0x7c6   :  { %1670 = vsyncpa [#allocation7], 1 }
 0x7c7   :  { %1671 = vsyncpa [#allocation8], 1 }

</bundles_post_ra>
